<compile_context>
chip_gen: v5e
topology: v5e:2x2
jax: 0.10.0
libtpu: 0.0.40
codegen_flags: <defaults>
</compile_context>

<pallas_src>
import functools
from dataclasses import dataclass
from typing import List

import jax
import jax.numpy as jnp
from jax.experimental import pallas as pl
from jax.experimental.pallas import tpu as pltpu


QUAD = 1  # CompositeField.quad


# ----------------------------- meta ---------------------------------------
@dataclass
class IntensityMeta:
    name: str
    keypoints: List[str]
    n_confidences: int = 1
    n_vectors: int = 1
    n_scales: int = 1

    @property
    def n_fields(self):
        return len(self.keypoints)


def _cdiv(a, b):
    return -(-a // b)


def _round_up(a, b):
    return _cdiv(a, b) * b


def _group_sizes(meta):
    out_features = meta.n_fields * 4 ** QUAD
    return ([out_features] * meta.n_confidences
            + [2 * out_features] * meta.n_vectors
            + [out_features] * meta.n_vectors
            + [out_features] * meta.n_scales)


# --------------------------- Pallas kernel --------------------------------
def _composite_kernel(x_ref, w_ref, b_ref, o_ref, *, sig_end, exp_start):
    """Fused 1x1-conv head, weights-stationary layout.

    Shapes (channels on sublanes, pixels on lanes):
      x_ref : (C_in,  T)    pixel tile of one batch element (T multiple of 128)
      w_ref : (C_out, C_in) fused head weights   (grid-invariant)
      b_ref : (C_out, 1)    fused head bias, f32 (grid-invariant)
      o_ref : (C_out, T)

    Channel bands along the sublane axis (static Python ints, 8-aligned):
      [0, sig_end)          -> sigmoid  (class confidences, eval mode)
      [sig_end, exp_start)  -> identity (reg vectors + reg spreads)
      [exp_start, C_out)    -> exp      (scales, eval mode)
    """
    y = jnp.dot(w_ref[...], x_ref[...], preferred_element_type=jnp.float32)
    y = y + b_ref[...]                       # f32 accumulation / activations
    c_out = o_ref.shape[0]
    if sig_end > 0:
        # sigmoid(x) = 1/(1+exp(-x)); exp and approx reciprocal both run on the
        # EUP slot, keeping the divide off the already-busy VALU path.
        yc = y[:sig_end, :]
        sig = pl.reciprocal(1.0 + jnp.exp(-yc), approx=True)
        o_ref[:sig_end, :] = sig.astype(o_ref.dtype)
    if exp_start > sig_end:
        o_ref[sig_end:exp_start, :] = y[sig_end:exp_start, :].astype(o_ref.dtype)
    if c_out > exp_start:
        o_ref[exp_start:, :] = jnp.exp(y[exp_start:, :]).astype(o_ref.dtype)


# ----------------------- hardware-aware tile selection ----------------------
def _vmem_budget_bytes():
    try:
        cap = int(pltpu.get_tpu_info().vmem_capacity_bytes)
    except Exception:
        cap = 64 * 1024 * 1024          # conservative (v7x per-TC physical)
    # ~25% headroom for Mosaic internal scratch / semaphores; cap at 96 MiB.
    return max(min(cap * 3 // 4, 96 * 1024 * 1024), 8 * 1024 * 1024)


def _num_tensorcores():
    # v5e/v6e report 1 TC/chip; v7x-style megacore chips report >1.  Falls back
    # to 1 (single-core schedule) if the attribute is unavailable.
    try:
        return max(int(getattr(jax.devices()[0], "num_cores", 1) or 1), 1)
    except Exception:
        return 1


def _pick_tile_and_vmem(hw, n_batch, c_in, c_out, in_bpe, out_bpe, w_bpe):
    """Largest lane-dense pixel tile whose double-buffered in+out tiles plus the
    resident weights fit the per-generation VMEM budget.  On megacore chips the
    tile is shrunk (only if it helps) to keep >= 2 grid steps per TensorCore."""
    vmem_budget = _vmem_budget_bytes()
    n_cores = _num_tensorcores()

    fixed = 2 * (c_out * c_in * w_bpe + c_out * 4)          # weights + bias (x2 safe)
    per_lane = 2 * (c_in * in_bpe + c_out * out_bpe)        # double-buffered tiles
    avail = vmem_budget - fixed - 4 * 1024 * 1024
    max_lanes = max(avail // per_lane, 128)

    hw128 = _round_up(hw, 128)
    candidates = [t for t in (8192, 4096, 2048, 1024, 512, 256, 128)
                  if t <= hw128 and t <= max_lanes]
    if not candidates:
        candidates = [128]

    tile_hw = candidates[0]                                  # largest fitting tile
    if n_cores > 1:
        def steps(t):
            return n_batch * _cdiv(hw, t)
        target = 2 * n_cores
        best = None
        for t in candidates:                                 # descending sizes
            if steps(t) >= target:
                best = t
                break
        if best is None:
            max_steps = max(steps(t) for t in candidates)
            best = next(t for t in candidates if steps(t) == max_steps)
        tile_hw = best

    need = fixed + per_lane * tile_hw
    vmem_limit = int(min(max(need * 2, 32 * 1024 * 1024), vmem_budget))
    return tile_hw, vmem_limit


# ------------------------------ pallas_call --------------------------------
def composite_field_matmul(x3, w_fused, b_fused, sig_end, exp_start,
                           tile_hw, vmem_limit, out_dtype):
    """x3: (N, C_in, HW) -> (N, C_out, HW); ragged last lane-tile handled by Pallas."""
    n, c_in, hw = x3.shape
    c_out = w_fused.shape[0]
    grid = (n, pl.cdiv(hw, tile_hw))
    kernel = functools.partial(_composite_kernel,
                               sig_end=sig_end, exp_start=exp_start)

    out_bpe = jnp.dtype(out_dtype).itemsize
    flops = 2 * n * c_out * c_in * hw
    transcendentals = n * hw * (2 * sig_end + (c_out - exp_start))
    bytes_accessed = (x3.size * jnp.dtype(x3.dtype).itemsize
                      + n * c_out * hw * out_bpe
                      + w_fused.size * jnp.dtype(w_fused.dtype).itemsize
                      + b_fused.size * 4)

    return pl.pallas_call(
        kernel,
        out_shape=jax.ShapeDtypeStruct((n, c_out, hw), out_dtype),
        grid_spec=pltpu.PrefetchScalarGridSpec(
            num_scalar_prefetch=0,
            grid=grid,
            in_specs=[
                # batch dim squeezed; lane-dense pixel tile on the last axis
                pl.BlockSpec((None, c_in, tile_hw), lambda i, t: (i, 0, t)),
                # grid-invariant weights / bias (full arrays, resident)
                pl.BlockSpec((c_out, c_in), lambda i, t: (0, 0)),
                pl.BlockSpec((c_out, 1), lambda i, t: (0, 0)),
            ],
            out_specs=pl.BlockSpec((None, c_out, tile_hw), lambda i, t: (i, 0, t)),
        ),
        compiler_params=pltpu.CompilerParams(
            dimension_semantics=("parallel", "parallel"),
            vmem_limit_bytes=vmem_limit,
        ),
        cost_estimate=pl.CostEstimate(flops=flops,
                                      transcendentals=transcendentals,
                                      bytes_accessed=bytes_accessed),
    )(x3, w_fused, b_fused)


# ---------------------------- parameters -----------------------------------
@dataclass
class HeadParams:
    w_fused: jnp.ndarray        # (C_out_pad, C_in), band-aligned fused weights
    b_fused: jnp.ndarray        # (C_out_pad, 1), f32
    sig_end: int                # padded-coordinate band boundaries (8-aligned)
    exp_start: int
    sizes: List[int]            # original per-group channel counts
    padded_sizes: List[int]     # 8-aligned per-group channel counts


def init_params(key, meta, in_features, row_align=8):
    """Deterministic fused parameters for all head 1x1 convolutions.  Each
    channel group (class / reg / spread / scale) is zero-padded to a multiple
    of `row_align` rows so activation-band boundaries land on sublane
    boundaries for any meta; the wrapper split skips the pad rows."""
    sizes = _group_sizes(meta)
    padded_sizes = [_round_up(s, row_align) for s in sizes]

    ws, bs, ws_pad, bs_pad = [], [], [], []
    for s, sp in zip(sizes, padded_sizes):
        key, kw, kb = jax.random.split(key, 3)
        w = jax.random.normal(kw, (s, in_features), jnp.float32) * 0.1
        b = jax.random.normal(kb, (s,), jnp.float32) * 0.1
        ws.append(w)
        bs.append(b)
        ws_pad.append(jnp.pad(w, ((0, sp - s), (0, 0))))
        bs_pad.append(jnp.pad(b, (0, sp - s)))

    nc, nv = meta.n_confidences, meta.n_vectors
    sig_end = sum(padded_sizes[:nc])
    exp_start = sum(padded_sizes[:nc + 2 * nv])

    params = HeadParams(
        w_fused=jnp.concatenate(ws_pad, axis=0),
        b_fused=jnp.concatenate(bs_pad)[:, None],
        sig_end=sig_end,
        exp_start=exp_start,
        sizes=sizes,
        padded_sizes=padded_sizes)
    # un-padded fused params, for the pure-JAX reference only
    w_unpadded = jnp.concatenate(ws, axis=0)
    b_unpadded = jnp.concatenate(bs)
    return params, w_unpadded, b_unpadded


# ---------------------------- forward --------------------------------------
def make_composite_field_forward(meta, params: HeadParams, out_dtype=None):
    """Jitted eval-mode forward: x (N, C_in, H, W) -> list of head tensors.
    out_dtype (e.g. jnp.bfloat16) decouples the store dtype from the input
    dtype; weights / accumulation stay f32 unless the input itself is bf16."""
    sizes = list(params.sizes)
    padded_sizes = list(params.padded_sizes)
    sig_end, exp_start = params.sig_end, params.exp_start
    nc, nv = meta.n_confidences, meta.n_vectors

    @jax.jit
    def forward(x_nchw, w_fused, b_fused):
        n, c_in, h, w = x_nchw.shape
        hw = h * w
        c_out = w_fused.shape[0]
        odt = jnp.dtype(out_dtype) if out_dtype is not None else jnp.dtype(x_nchw.dtype)

        # kernel weights in the input dtype (bf16 input => bf16 MXU weights,
        # documented); bias stays f32 so accumulation / activations stay f32.
        w_k = w_fused.astype(x_nchw.dtype)

        in_bpe = jnp.dtype(x_nchw.dtype).itemsize
        tile_hw, vmem_limit = _pick_tile_and_vmem(
            hw, n, c_in, c_out, in_bpe, odt.itemsize, in_bpe)

        x3 = x_nchw.reshape(n, c_in, hw)     # free reshape: no pad, no transpose
        y3 = composite_field_matmul(x3, w_k, b_fused, sig_end, exp_start,
                                    tile_hw, vmem_limit, odt)
        y = y3.reshape(n, c_out, h, w)       # no slice: out_shape is exactly HW

        # dequad = PixelShuffle(2) + [:-1,:-1] crop, applied once to the full
        # fused tensor.  Every (padded) channel group is a multiple of 4, so
        # this is identical to the per-group shuffles of the reference module;
        # XLA fuses reshape/transpose/crop into a single copy.
        for _ in range(QUAD):
            nn_, cc, hh, ww = y.shape
            y = y.reshape(nn_, cc // 4, 2, 2, hh, ww)
            y = jnp.transpose(y, (0, 1, 4, 2, 5, 3)).reshape(
                nn_, cc // 4, 2 * hh, 2 * ww)
            y = y[:, :, :-1, :-1]

        # split into the individual head outputs, skipping the pad rows
        shrink = 4 ** QUAD
        chunks, off = [], 0
        for s, sp in zip(sizes, padded_sizes):
            chunks.append(y[:, off:off + s // shrink])
            off += sp // shrink

        classes_x = chunks[:nc]
        regs_x = chunks[nc:nc + nv]
        regs_logb = chunks[nc + nv:nc + 2 * nv]
        scales_x = chunks[nc + 2 * nv:]

        # reg reshape: (N, C, H, W) -> (N, C//2, 2, H, W)
        regs_x = [r.reshape(r.shape[0], r.shape[1] // 2, 2,
                            r.shape[2], r.shape[3]) for r in regs_x]
        return classes_x + regs_x + regs_logb + scales_x

    return forward


# --------------------------- pure-JAX reference -----------------------------
def reference_forward(x, w_fused, b_fused, meta):
    sizes = _group_sizes(meta)
    nc, nv = meta.n_confidences, meta.n_vectors
    sig_end = sum(sizes[:nc])
    exp_start = sum(sizes[:nc + 2 * nv])

    y = jnp.einsum('oc,nchw->nohw', w_fused, x) + b_fused[None, :, None, None]
    y = jnp.concatenate([jax.nn.sigmoid(y[:, :sig_end]),
                         y[:, sig_end:exp_start],
                         jnp.exp(y[:, exp_start:])], axis=1)
    chunks, off = [], 0
    for s in sizes:
        chunks.append(y[:, off:off + s])
        off += s

    def dequad(t):
        for _ in range(QUAD):
            nn_, cc, hh, ww = t.shape
            t = t.reshape(nn_, cc // 4, 2, 2, hh, ww)
            t = jnp.transpose(t, (0, 1, 4, 2, 5, 3)).reshape(
                nn_, cc // 4, 2 * hh, 2 * ww)
            t = t[:, :, :-1, :-1]
        return t

    classes_x = [dequad(c) for c in chunks[:nc]]
    regs_x = [dequad(c) for c in chunks[nc:nc + nv]]
    regs_logb = [dequad(c) for c in chunks[nc + nv:nc + 2 * nv]]
    scales_x = [dequad(c) for c in chunks[nc + 2 * nv:]]
    regs_x = [r.reshape(r.shape[0], r.shape[1] // 2, 2,
                        r.shape[2], r.shape[3]) for r in regs_x]
    return classes_x + regs_x + regs_logb + scales_x


# ------------------------------- main --------------------------------------
if __name__ == "__main__":
    # 5 keypoints => group sizes (20, 40, 20, 20): exercises the 8-row band
    # padding; H*W = 288 (not a multiple of 128): exercises the ragged tile.
    meta = IntensityMeta(name="cif", keypoints=["kp%d" % i for i in range(5)])
    N, C_IN, H, W = 2, 32, 16, 18

    key = jax.random.PRNGKey(0)
    k_x, k_p = jax.random.split(key)
    x = jax.random.normal(k_x, (N, C_IN, H, W), jnp.float32)

    params, w_unpadded, b_unpadded = init_params(k_p, meta, C_IN)

    forward = make_composite_field_forward(meta, params)
    outs = jax.block_until_ready(forward(x, params.w_fused, params.b_fused))

    # full-forward correctness check against a pure-JAX reference (f32).
    # approx reciprocal in the sigmoid is ~1e-3 accurate -> 5e-3 tolerance.
    refs = reference_forward(x, w_unpadded, b_unpadded, meta)
    assert len(outs) == len(refs)
    for o, r in zip(outs, refs):
        assert o.shape == r.shape, (o.shape, r.shape)
        assert jnp.allclose(o, r, atol=5e-3, rtol=5e-3), \
            float(jnp.max(jnp.abs(o - r)))

    # shape sanity (quad=1 -> spatial becomes (2H-1, 2W-1))
    nf = meta.n_fields
    assert outs[0].shape == (N, nf, 2 * H - 1, 2 * W - 1)          # class
    assert outs[1].shape == (N, nf, 2, 2 * H - 1, 2 * W - 1)       # reg
    assert outs[2].shape == (N, nf, 2 * H - 1, 2 * W - 1)          # reg logb
    assert outs[3].shape == (N, nf, 2 * H - 1, 2 * W - 1)          # scale

    # bf16 OUTPUT with f32 input / weights / accumulation: halves HBM writeback.
    forward_b = make_composite_field_forward(meta, params, out_dtype=jnp.bfloat16)
    outs_b = jax.block_until_ready(forward_b(x, params.w_fused, params.b_fused))
    for o, r in zip(outs_b, refs):
        assert o.shape == r.shape and o.dtype == jnp.bfloat16
        assert jnp.allclose(o.astype(jnp.float32), r, atol=5e-2, rtol=5e-2)

    # bf16 INPUT path (weights cast to bf16; looser tolerance, documented).
    outs_bi = jax.block_until_ready(
        forward(x.astype(jnp.bfloat16), params.w_fused, params.b_fused))
    for o, r in zip(outs_bi, refs):
        assert o.shape == r.shape and o.dtype == jnp.bfloat16
        assert jnp.allclose(o.astype(jnp.float32), r, atol=0.1, rtol=0.1)

    print("KERNEL_OK")
</pallas_src>

<mosaic_0001>
module attributes {stable_mosaic.version = 11 : i64} {
  func.func @_composite_kernel(%arg0: i32, %arg1: i32, %arg2: memref<1x32x256xf32, #tpu.memory_space<vmem>>, %arg3: memref<112x32xf32, #tpu.memory_space<vmem>>, %arg4: memref<112x1xf32, #tpu.memory_space<vmem>>, %arg5: memref<1x112x256xf32, #tpu.memory_space<vmem>>) attributes {dimension_semantics = [#tpu.dimension_semantics<parallel>, #tpu.dimension_semantics<parallel>], iteration_bounds = array<i64: 2, 2>, scalar_prefetch = 0 : i64, scratch_operands = 0 : i64, tpu.core_type = #tpu.core_type<tc>, window_params = [{transform_indices = @transform_0, window_bounds = array<i64: 1, 32, 256>}, {pipeline_mode = #tpu.pipeline_mode<synchronous>, transform_indices = @transform_1, window_bounds = array<i64: 112, 32>}, {pipeline_mode = #tpu.pipeline_mode<synchronous>, transform_indices = @transform_2, window_bounds = array<i64: 112, 1>}, {transform_indices = @transform_3, window_bounds = array<i64: 1, 112, 256>}]} {
    %c0 = arith.constant 0 : index
    %c0_0 = arith.constant 0 : index
    %0 = vector.load %arg3[%c0, %c0_0] : memref<112x32xf32, #tpu.memory_space<vmem>>, vector<112x32xf32>
    %c0_1 = arith.constant 0 : index
    %c0_2 = arith.constant 0 : index
    %c0_3 = arith.constant 0 : index
    %1 = vector.load %arg2[%c0_1, %c0_2, %c0_3] : memref<1x32x256xf32, #tpu.memory_space<vmem>>, vector<1x32x256xf32>
    %2 = vector.shape_cast %1 : vector<1x32x256xf32> to vector<32x256xf32>
    %cst = arith.constant dense<0.000000e+00> : vector<112x256xf32>
    %3 = tpu.matmul %0, %2, %cst {dimension_numbers = #tpu.dot_dimension_numbers<[1], [0], [0], [1], [0, 0, 1, 1], [], []>} : vector<112x32xf32>, vector<32x256xf32>, vector<112x256xf32> -> vector<112x256xf32>
    %c0_4 = arith.constant 0 : index
    %c0_5 = arith.constant 0 : index
    %4 = vector.load %arg4[%c0_4, %c0_5] : memref<112x1xf32, #tpu.memory_space<vmem>>, vector<112x1xf32>
    %5 = vector.broadcast %4 : vector<112x1xf32> to vector<112x256xf32>
    %6 = arith.addf %3, %5 : vector<112x256xf32>
    %7 = vector.extract_strided_slice %6 {offsets = [0, 0], sizes = [24, 256], strides = [1, 1]} : vector<112x256xf32> to vector<24x256xf32>
    %cst_6 = arith.constant 0.000000e+00 : f32
    %8 = vector.broadcast %cst_6 : f32 to vector<24x256xf32>
    %9 = arith.subf %8, %7 : vector<24x256xf32>
    %10 = math.exp %9 : vector<24x256xf32>
    %cst_7 = arith.constant 1.000000e+00 : f32
    %11 = vector.broadcast %cst_7 : f32 to vector<24x256xf32>
    %12 = arith.addf %11, %10 : vector<24x256xf32>
    %13 = tpu.reciprocal %12 {approx = true} : vector<24x256xf32> -> vector<24x256xf32>
    %c0_8 = arith.constant 0 : index
    %c0_9 = arith.constant 0 : index
    %c0_10 = arith.constant 0 : index
    %14 = vector.load %arg5[%c0_8, %c0_9, %c0_10] : memref<1x112x256xf32, #tpu.memory_space<vmem>>, vector<1x24x256xf32>
    %15 = vector.shape_cast %14 : vector<1x24x256xf32> to vector<24x256xf32>
    %16 = vector.shape_cast %13 : vector<24x256xf32> to vector<1x24x256xf32>
    tpu.vector_store %arg5[%c0_8, %c0_9, %c0_10], %16 {strides = array<i32>} : memref<1x112x256xf32, #tpu.memory_space<vmem>>, vector<1x24x256xf32>,
    %17 = vector.extract_strided_slice %6 {offsets = [24, 0], sizes = [64, 256], strides = [1, 1]} : vector<112x256xf32> to vector<64x256xf32>
    %c0_11 = arith.constant 0 : index
    %c24 = arith.constant 24 : index
    %c0_12 = arith.constant 0 : index
    %18 = vector.load %arg5[%c0_11, %c24, %c0_12] : memref<1x112x256xf32, #tpu.memory_space<vmem>>, vector<1x64x256xf32>
    %19 = vector.shape_cast %18 : vector<1x64x256xf32> to vector<64x256xf32>
    %20 = vector.shape_cast %17 : vector<64x256xf32> to vector<1x64x256xf32>
    tpu.vector_store %arg5[%c0_11, %c24, %c0_12], %20 {strides = array<i32>} : memref<1x112x256xf32, #tpu.memory_space<vmem>>, vector<1x64x256xf32>,
    %21 = vector.extract_strided_slice %6 {offsets = [88, 0], sizes = [24, 256], strides = [1, 1]} : vector<112x256xf32> to vector<24x256xf32>
    %22 = math.exp %21 : vector<24x256xf32>
    %c0_13 = arith.constant 0 : index
    %c88 = arith.constant 88 : index
    %c0_14 = arith.constant 0 : index
    %23 = vector.load %arg5[%c0_13, %c88, %c0_14] : memref<1x112x256xf32, #tpu.memory_space<vmem>>, vector<1x24x256xf32>
    %24 = vector.shape_cast %23 : vector<1x24x256xf32> to vector<24x256xf32>
    %25 = vector.shape_cast %22 : vector<24x256xf32> to vector<1x24x256xf32>
    tpu.vector_store %arg5[%c0_13, %c88, %c0_14], %25 {strides = array<i32>} : memref<1x112x256xf32, #tpu.memory_space<vmem>>, vector<1x24x256xf32>,
    return
  }
  func.func @transform_0(%arg0: i32, %arg1: i32) -> (i32, i32, i32) {
    %c0_i32 = arith.constant 0 : i32
    %c0_i32_0 = arith.constant 0 : i32
    return %arg0, %c0_i32, %arg1 : i32, i32, i32
  }
  func.func @transform_1(%arg0: i32, %arg1: i32) -> (i32, i32) {
    %c0_i32 = arith.constant 0 : i32
    %c0_i32_0 = arith.constant 0 : i32
    %c0_i32_1 = arith.constant 0 : i32
    return %c0_i32, %c0_i32_0 : i32, i32
  }
  func.func @transform_2(%arg0: i32, %arg1: i32) -> (i32, i32) {
    %c0_i32 = arith.constant 0 : i32
    %c0_i32_0 = arith.constant 0 : i32
    %c0_i32_1 = arith.constant 0 : i32
    return %c0_i32, %c0_i32_0 : i32, i32
  }
  func.func @transform_3(%arg0: i32, %arg1: i32) -> (i32, i32, i32) {
    %c0_i32 = arith.constant 0 : i32
    %c0_i32_0 = arith.constant 0 : i32
    return %arg0, %c0_i32, %arg1 : i32, i32, i32
  }
}

</mosaic_0001>

<bundles_post_ra>
// kernel: forward.1
= control target key start
LH: loop header
LB: loop body
LE: loop exit
PB: predicated region body
PF: predicated region fallthrough
CT: control target
= control target key end

     0   :  { %s2323_s12 = smov 0   ;;  %s2325_s13 = smov 0   ;;  %s3160_s0 = inlined_call_operand.vmem [shape: f32[2,32,288], index: 0, kind: input, shape index: {}]   ;;  %s3161_s1 = inlined_call_operand.vmem [shape: f32[112,32], index: 1, kind: input, shape index: {}]   ;;  %s3162_s2 = inlined_call_operand.vmem [shape: f32[112,1], index: 2, kind: input, shape index: {}]   ;;  %s3163_s3 = inlined_call_operand.vmem [shape: f32[2,112,288], index: 3, kind: output, shape index: {}]  }
   0x1   :  { %s2327_s14 = smov 0   ;;  %s2329_s15 = smov 0  }
   0x2   :  { %s2331_s16 = smov 0   ;;  %s2333_s17 = smov 0  }
   0x3   :  { %s2335_s18 = smov 0  }
   0x4 LB: > { %s22_s19 = sadd.s32 1, %s2192_s16  ;;  %s25_s20 = sadd.s32 1, %s2196_s17  ;;  %s2200_s18 = sphi %s2335_s18, %s13_s18   ;;  %s2196_s17 = sphi %s2333_s17, %s3195_s17   ;;  %s2192_s16 = sphi %s2331_s16, %s3194_s16   ;;  %s2188_s15 = sphi %s2329_s15, %s3193_s15   ;;  %s2184_s14 = sphi %s2327_s14, %s3192_s14   ;;  %s2180_s13 = sphi %s2325_s13, %s3191_s13   ;;  %s2176_s12 = sphi %s2323_s12, %s3190_s12  }
   0x5   : > { %p23_p0 = scmp.ge.s32.totalorder %s22_s19, 2  ;;  %s1551_s21 = sadd.s32 4294967295, %s2200_s18  }
   0x6   : > { %p41_p1 = scmp.ne.s32.totalorder %s2180_s13, %s2176_s12  ;;  %p42_p2 = scmp.eq.s32.totalorder %s2200_s18, 0 }
   0x7   : > { %s3197_s19 = smov (%p23_p0, %s22_s19), 0  ;;  %s3199_s20 = smov (!%p23_p0, %s25_s20), %s2196_s17 }
   0x8   : > { %p27_p3 = scmp.ge.s32.totalorder %s3199_s20, 2  ;;  %p115_p4 = scmp.eq.s32.totalorder %s1551_s21, 3 }
   0x9   : > { %s30_s22 = ssub.s32 %s2192_s16, %s3197_s19  ;;  %p43_p5 = por %p42_p2, %p41_p1 }
   0xa   : > { %s3201_s20 = smov (%p27_p3, %s3199_s20), 0  ;;  %p2371_p6 = por %p115_p4, %p41_p1 }
   0xb   : > { %s29_s24 = ssub.s32 %s2196_s17, %s3201_s20  ;;  %s34_s26 = sadd.s32 1, %s2180_s13 }
   0xc   : > { %s31_s25 = sor.u32 %s30_s22, %s29_s24  ;;  %p1554_p8 = scmp.ge.s32.totalorder %s2200_s18, 4 }
   0xd   : > { %p32_p7 = scmp.eq.s32.totalorder %s31_s25, 0 }
   0xe   : > { %143 = sbr.rel (%p1554_p8) target bundleno = 96 (0x60), region = 24 }
   0xf   : > { %s2379_s27 = scalar_select %p32_p7, %s2180_s13, %s34_s26  }
  0x13   : > { %146 = sbr.rel (!%p43_p5) target bundleno = 96 (0x60), region = 28  ;;  %s148_s28 = sand.u32 (%p43_p5), 1, %s2180_s13  }
  0x14   : > { %s1556_s29 = sshll.u32 (%p43_p5), %s2192_s16, 1  ;;  %s1555_s30 = sshll.u32 (%p43_p5), %s148_s28, 6 }
  0x15   : > { %s152_s4 = ssub.s32 (%p43_p5), 3, %s1556_s29  ;;  %s1659_s5 = smul.u32 (%p43_p5), 12, %s2196_s17 }
  0x16   : > { %p153_p9 = scmp.lt.s32.totalorder (%p43_p5), %s152_s4, 2  ;;  %s2392_s22 = scalar_lea.vmem (%p43_p5), [#allocation2], %s1555_s30  }
  0x17   : > { %s158_s6 = sadd.s32 (%p43_p5), %s1659_s5, %s1556_s29 }
  0x18   : > { %s3203_s4 = smov (!%p153_p9, %s152_s4), 2  ;;  %s1559_s8 = sshll.u32 %s158_s6, 3 }
  0x19   : > { %s1557_s7 = sshll.u32 %s3203_s4, 5  ;;  %s2388_s11 = scalar_lea.vmem %s3160_s0, %s1559_s8  }
  0x1a   : > { %s2390_s21 = sshll.u32 %s3203_s4, 3  ;;  %p1561_p10 = scmp.eq.s32.totalorder %s1557_s7, 0 }
  0x1b   : > { %p165_p11 = scmp.lt.u32.totalorder (!%p1561_p10), %s2390_s21, 8 }
  0x1c   : > { %164 = sbr.rel (%p1561_p10) target bundleno = 96 (0x60), region = 32 }
  0x21   : > { %168 = sbr.rel (%p165_p11) target bundleno = 84 (0x54), region = 36  ;;  %s2396_s24 = sand.u32 (!%p165_p11), 7, %s2390_s21  }
  0x22   : > { %p191_p12 = scmp.eq.s32.totalorder (!%p165_p11), %s2396_s24, 0  ;;  %p1562_p13 = scmp.ne.s32.totalorder (!%p165_p11), %s2396_s24, 0 }
  0x26   : > { %194 = sbr.rel (%p1562_p13) target bundleno = 56 (0x38), region = 51  ;;  %s195_s25 = sshrl.u32 (!%p1562_p13), %s2390_s21, 3 }
  0x27   : > { %s196_s26 = sshrl.u32 (!%p1562_p13), %s195_s25, 3  ;;  %s2401_s28 = sand.u32 (!%p1562_p13), 7, %s195_s25  }
  0x28   : > { %s1643_s29 = sshll.u32 (!%p1562_p13), %s196_s26, 6  ;;  %p1569_p0 = scmp.le.s32.totalorder (!%p1562_p13), %s2401_s28, 0 }
  0x29   : > { %s2404_s30 = scalar_lea.vmem (!%p1562_p13), %s2388_s11, %s1643_s29   ;;  %s2407_s4 = scalar_lea.vmem (!%p1562_p13), %s2392_s22, %s1643_s29 [#allocation2]  }
  0x2b   : > { %1426 = sbr.rel (%p1569_p0) target bundleno = 56 (0x38), region = 240  ;;  %s3165_s5 = smov (!%p1569_p0), %s2407_s4 }
  0x2c   : > { %s3166_s6 = smov (!%p1569_p0), %s2404_s30  ;;  %s2416_s7 = smov (!%p1569_p0), 0  }
  0x2d   : > { %s2214_s8 = smov (!%p1569_p0), 0  }
  0x30 LB: >> { %v293_v0 = vld [vmem:[%s2208_s6] sm:$0xff]  ;;  %v295_v1 = vld [vmem:[%s2208_s6 + $0x18] sm:$0xff]  ;;  %v297_v2 = vld [vmem:[%s2208_s6 + $0x30] sm:$0xff]  ;;  %s301_s9 = sadd.s32 1, %s2212_s7  ;;  %s287_s8 = sadd.s32 1, %s2216_s8   ;;  %s2216_s8 = sphi %s2214_s8, %s287_s8   ;;  %s2212_s7 = sphi %s2416_s7, %s3167_s7   ;;  %s2208_s6 = sphi %s3166_s6, %s306_s6   ;;  %s2204_s5 = sphi %s3165_s5, %s307_s5  }
  0x31   : >> { %294 = vst [vmem:[%s2204_s5] sm:$0xff] %v293_v0  ;;  %v299_v3 = vld [vmem:[%s2208_s6 + $0x48] sm:$0xff]  ;;  %p302_p1 = scmp.ge.s32.totalorder %s301_s9, %s2401_s28  ;;  %p286_p2 = scmp.ge.s32.totalorder %s287_s8, %s2401_s28 }
  0x32   : >> { %296 = vst [vmem:[%s2204_s5 + $0x10] sm:$0xff] %v295_v1 }
  0x33   : >> { %298 = vst [vmem:[%s2204_s5 + $0x20] sm:$0xff] %v297_v2  ;;  %s3205_s9 = smov (%p302_p1, %s301_s9), 0  ;;  %289 = sbr.rel (!%p286_p2) target bundleno = 48 (0x30), region = 246 }
  0x34   : >> { %300 = vst [vmem:[%s2204_s5 + $0x30] sm:$0xff] %v299_v3  ;;  %s1570_s10 = sshll.u32 %s3205_s9, 3  ;;  %s3167_s7 = smov %s3205_s9 }
  0x35   : >> { %s306_s6 = scalar_lea.vmem %s2404_s30, %s1570_s10   ;;  %s307_s5 = scalar_lea.vmem %s2407_s4, %s1570_s10 [#allocation2]  }
  0x38 PF: > { %310 = sbr.rel (%p191_p12) target bundleno = 84 (0x54), region = 69  ;;  %s312_s25 = ssub.s32 (!%p191_p12), %s2390_s21, %s2396_s24 }
  0x39   : > { %s316_s26 = sshrl.u32 (!%p191_p12), %s2390_s21, 3  ;;  %s2437_s29 = scalar_lea.vmem (!%p191_p12), %s2388_s11, %s312_s25 }
  0x3a   : > { %s2440_s7 = scalar_lea.vmem (!%p191_p12), %s2392_s22, %s312_s25 [#allocation2]  ;;  %s317_s8 = sshrl.u32 (!%p191_p12), %s316_s26, 3 }
  0x3b   : > { %s2442_s9 = sand.u32 (!%p191_p12), 7, %s316_s26   ;;  %s1645_s28 = sshll.u32 (!%p191_p12), %s317_s8, 6 }
  0x3c   : > { %s2445_s30 = scalar_lea.vmem (!%p191_p12), %s2388_s11, %s1645_s28   ;;  %s2448_s4 = scalar_lea.vmem (!%p191_p12), %s2392_s22, %s1645_s28 [#allocation2]  }
  0x3d   : > { %p1578_p3 = scmp.le.s32.totalorder %s2442_s9, 0 }
  0x3e   : > { %s3168_s5 = smov (!%p1578_p3), %s2448_s4  ;;  %s3169_s6 = smov (!%p1578_p3), %s2445_s30 }
  0x3f   : > { %1454 = sbr.rel (%p1578_p3) target bundleno = 76 (0x4c), region = 262  ;;  %s2226_s10 = smov (!%p1578_p3), 0  }
  0x40   : > { %s2230_s25 = smov (!%p1578_p3), 0  }
  0x44 LB: >> { %v414_v4 = vld [vmem:[%s2224_s6] sm:$0xff]  ;;  %v416_v5 = vld [vmem:[%s2224_s6 + $0x18] sm:$0xff]  ;;  %v418_v6 = vld [vmem:[%s2224_s6 + $0x30] sm:$0xff]  ;;  %s422_s26 = sadd.s32 1, %s2228_s10  ;;  %s408_s25 = sadd.s32 1, %s2232_s25   ;;  %s2232_s25 = sphi %s2230_s25, %s408_s25   ;;  %s2228_s10 = sphi %s2226_s10, %s2227_s10   ;;  %s2224_s6 = sphi %s3169_s6, %s427_s6   ;;  %s2220_s5 = sphi %s3168_s5, %s428_s5  }
  0x45   : >> { %415 = vst [vmem:[%s2220_s5] sm:$0xff] %v414_v4  ;;  %v420_v7 = vld [vmem:[%s2224_s6 + $0x48] sm:$0xff]  ;;  %p423_p4 = scmp.ge.s32.totalorder %s422_s26, %s2442_s9  ;;  %p407_p5 = scmp.ge.s32.totalorder %s408_s25, %s2442_s9 }
  0x46   : >> { %417 = vst [vmem:[%s2220_s5 + $0x10] sm:$0xff] %v416_v5 }
  0x47   : >> { %419 = vst [vmem:[%s2220_s5 + $0x20] sm:$0xff] %v418_v6  ;;  %s3207_s26 = smov (%p423_p4, %s422_s26), 0  ;;  %410 = sbr.rel (!%p407_p5) target bundleno = 68 (0x44), region = 268 }
  0x48   : >> { %421 = vst [vmem:[%s2220_s5 + $0x30] sm:$0xff] %v420_v7  ;;  %s1579_s8 = sshll.u32 %s3207_s26, 3  ;;  %s2227_s10 = smov %s3207_s26  }
  0x49   : >> { %s427_s6 = scalar_lea.vmem %s2445_s30, %s1579_s8   ;;  %s428_s5 = scalar_lea.vmem %s2448_s4, %s1579_s8 [#allocation2]  }
  0x4c PF: > { %s2298_s28 = smov 1  }
  0x4d   : > { %s429_s10 = sshll.u32 %s2298_s28, %s2396_s24 }
  0x4e   : > { %s1581_s8 = sadd.s32 4294967295, %s429_s10 }
  0x4f   : > { %v439_v8 = vld [vmem:[%s2437_s29] sm:%s1581_s8]  ;;  %v441_v9 = vld [vmem:[%s2437_s29 + $0x18] sm:%s1581_s8] }
  0x50   : > { %440 = vst [vmem:[%s2440_s7] sm:%s1581_s8] %v439_v8  ;;  %v443_v10 = vld [vmem:[%s2437_s29 + $0x30] sm:%s1581_s8] }
  0x51   : > { %442 = vst [vmem:[%s2440_s7 + $0x10] sm:%s1581_s8] %v441_v9  ;;  %v445_v11 = vld [vmem:[%s2437_s29 + $0x48] sm:%s1581_s8] }
  0x52   : > { %444 = vst [vmem:[%s2440_s7 + $0x20] sm:%s1581_s8] %v443_v10 }
  0x53   : > { %446 = vst [vmem:[%s2440_s7 + $0x30] sm:%s1581_s8] %v445_v11 }
  0x54 PF: > { %p1582_p7 = scmp.ge.u32.totalorder %s2390_s21, 8 }
  0x55   : > { %s2299_s9 = smov (!%p1582_p7), 1  }
  0x56   : > { %171 = sbr.rel (%p1582_p7) target bundleno = 96 (0x60), region = 40  ;;  %s172_s24 = sshll.u32 (!%p1582_p7), %s2299_s9, %s2390_s21 }
  0x57   : > { %s1583_s30 = sadd.s32 (!%p1582_p7), 4294967295, %s172_s24 }
  0x5b   : > { %v182_v12 = vld [vmem:[%s2388_s11] sm:%s1583_s30]  ;;  %v184_v13 = vld [vmem:[%s2388_s11 + $0x18] sm:%s1583_s30] }
  0x5c   : > { %183 = vst [vmem:[%s2392_s22] sm:%s1583_s30] %v182_v12  ;;  %v186_v14 = vld [vmem:[%s2388_s11 + $0x30] sm:%s1583_s30] }
  0x5d   : > { %185 = vst [vmem:[%s2392_s22 + $0x10] sm:%s1583_s30] %v184_v13  ;;  %v188_v15 = vld [vmem:[%s2388_s11 + $0x48] sm:%s1583_s30] }
  0x5e   : > { %187 = vst [vmem:[%s2392_s22 + $0x20] sm:%s1583_s30] %v186_v14 }
  0x5f   : > { %189 = vst [vmem:[%s2392_s22 + $0x30] sm:%s1583_s30] %v188_v15 }
  0x60 PF: > { %p1584_p8 = scmp.ge.s32.totalorder %s2200_s18, 1  ;;  %p449_p9 = scmp.lt.s32.totalorder %s2200_s18, 5 }
  0x62   : > { %p450_p10 = pnand %p1584_p8, %p449_p9 }
  0x63   : > { %s456_s7 = sand.u32 (!%p450_p10), 1, %s2176_s12  }
  0x64   : > { %453 = sbr.rel (%p450_p10) target bundleno = 521 (0x209), region = 94  ;;  %s1585_s11 = sshll.u32 (!%p450_p10), %s456_s7, 6 }
  0x65   : > { %s458_s5 = scalar_lea.vmem (!%p450_p10), [#allocation2], %s1585_s11  ;;  %s1660_s24 = smul.u32 (!%p450_p10), 224, %s456_s7 }
  0x67   : > { %s2617_s30 = scalar_lea.vmem (!%p450_p10), [#allocation3], %s1660_s24  }
  0x69   : > { %v512_v16 = vld [vmem:[%s3162_s2 + $0x10] sm:$0xff]  ;;  %v2300_v17 = vmov 0   ;;  %v510_v18 = vld [vmem:[%s3162_s2] sm:$0xff]  ;;  %v509_v20 = vld [vmem:[%s458_s5 + $0x38] sm:$0xff]  ;;  %vm594_vm0 = vcmask 261120   ;;  %s1614_s12 = sshll.u32 (%p2371_p6), %s2184_s14, 1 }
  0x6a   : > { %1980 = vset.pattern.permute.xlu1 %v2300_v17  ;;  %1979 = vset.pattern.permute.xlu0 %v2300_v17  ;;  %v508_v19 = vld [vmem:[%s458_s5 + $0x30] sm:$0xff]  ;;  %v506_v21 = vld [vmem:[%s458_s5 + $0x20] sm:$0xff]  ;;  %v507_v22 = vld [vmem:[%s458_s5 + $0x28] sm:$0xff]  ;;  %s1661_s7 = smul.u32 (%p2371_p6), 42, %s2188_s15  ;;  %s833_s21 = ssub.s32 (%p2371_p6), 3, %s1614_s12 }
  0x6b   : > { %536 = vperm.xlu1 %1980, %v512_v16   ;;  %526 = vperm.xlu0 %1979, %v510_v18   ;;  %v504_v23 = vld [vmem:[%s458_s5 + $0x10] sm:$0xff]  ;;  %v505_v24 = vld [vmem:[%s458_s5 + $0x18] sm:$0xff]  ;;  %v502_v25 = vld [vmem:[%s458_s5] sm:$0xff]  ;;  %p834_p11 = scmp.lt.s32.totalorder (%p2371_p6), %s833_s21, 2 }
  0x6c   : > { %1981 = vset.pattern.permute.xlu2 %v2300_v17  ;;  %649 = vmatpush.msra.mxu0 %v508_v19  ;;  %v503_v26 = vld [vmem:[%s458_s5 + $0x8] sm:$0xff]  ;;  %v488_v27 = vld [vmem:[%s3161_s1] sm:$0xff]  ;;  %v495_v28 = vld [vmem:[%s3161_s1 + $0x38] sm:$0xff]  ;;  %s839_s29 = sadd.s32 (%p2371_p6), %s1661_s7, %s1614_s12 }
  0x6d   : > { %1651 = vmatpush.msra.mxu2 %v508_v19  ;;  %708 = vmatpush.msra.mxu1 %v509_v20  ;;  %v513_v29 = vld [vmem:[%s3162_s2 + $0x18] sm:$0xff]  ;;  %v511_v30 = vld [vmem:[%s3162_s2 + $0x8] sm:$0xff]  ;;  %v514_v31 = vld [vmem:[%s3162_s2 + $0x20] sm:$0xff]  ;;  %s1616_s11 = sshll.u32 (%p2371_p6), %s839_s29, 3 }
  0x6e   : > { %1655 = vmatpush.msra.mxu3 %v509_v20  ;;  %650 = vmatpush.msra.mxu0 %v506_v21  ;;  %v489_v32 = vld [vmem:[%s3161_s1 + $0x8] sm:$0xff]  ;;  %v496_v33 = vld [vmem:[%s3161_s1 + $0x40] sm:$0xff]  ;;  %v521_v35 = vld [vmem:[%s3162_s2 + $0x58] sm:$0xff]  ;;  %s2670_s5 = scalar_lea.vmem (%p2371_p6), %s3163_s3, %s1616_s11  }
  0x6f   : > { %1652 = vmatpush.msra.mxu2 %v506_v21  ;;  %709 = vmatpush.msra.mxu1 %v507_v22  ;;  %v522_v34 = vld [vmem:[%s3162_s2 + $0x60] sm:$0xff]  ;;  %v515_v36 = vld [vmem:[%s3162_s2 + $0x28] sm:$0xff]  ;;  %v490_v37 = vld [vmem:[%s3161_s1 + $0x10] sm:$0xff] }
  0x70   : > { %1656 = vmatpush.msra.mxu3 %v507_v22  ;;  %651 = vmatpush.msra.mxu0 %v504_v23  ;;  %v497_v38 = vld [vmem:[%s3161_s1 + $0x48] sm:$0xff]  ;;  %v517_v39 = vld [vmem:[%s3162_s2 + $0x38] sm:$0xff]  ;;  %v516_v40 = vld [vmem:[%s3162_s2 + $0x30] sm:$0xff] }
  0x71   : > { %1653 = vmatpush.msra.mxu2 %v504_v23  ;;  %710 = vmatpush.msra.mxu1 %v505_v24  ;;  %v523_v41 = vld [vmem:[%s3162_s2 + $0x68] sm:$0xff]  ;;  %v491_v42 = vld [vmem:[%s3161_s1 + $0x18] sm:$0xff]  ;;  %v498_v43 = vld [vmem:[%s3161_s1 + $0x50] sm:$0xff] }
  0x72   : > { %1657 = vmatpush.msra.mxu3 %v505_v24  ;;  %652 = vmatpush.msra.mxu0 %v502_v25  ;;  %v519_v44 = vld [vmem:[%s3162_s2 + $0x48] sm:$0xff]  ;;  %v520_v45 = vld [vmem:[%s3162_s2 + $0x50] sm:$0xff]  ;;  %v518_v46 = vld [vmem:[%s3162_s2 + $0x40] sm:$0xff] }
  0x73   : > { %1654 = vmatpush.msra.mxu2 %v502_v25  ;;  %711 = vmatpush.msra.mxu1 %v503_v26  ;;  %v492_v47 = vld [vmem:[%s3161_s1 + $0x20] sm:$0xff]  ;;  %v499_v48 = vld [vmem:[%s3161_s1 + $0x58] sm:$0xff]  ;;  %v493_v49 = vld [vmem:[%s3161_s1 + $0x28] sm:$0xff] }
  0x74   : > { %1658 = vmatpush.msra.mxu3 %v503_v26  ;;  %1586 = vmatmul.msk.f32.vlgmr.msra.gmra.mxu0 %vm594_vm0, %v488_v27  ;;  %v500_v50 = vld [vmem:[%s3161_s1 + $0x60] sm:$0xff]  ;;  %v494_v51 = vld [vmem:[%s3161_s1 + $0x30] sm:$0xff]  ;;  %v501_v52 = vld [vmem:[%s3161_s1 + $0x68] sm:$0xff] }
  0x75   : > { %1593 = vmatmul.msk.f32.vlgmr.msra.gmra.mxu2 %vm594_vm0, %v495_v28  ;;  %1600 = vmatmul.msk.f32.vlgmr.msra.gmra.mxu1 %vm594_vm0, %v488_v27 }
  0x76   : > { %1607 = vmatmul.msk.f32.vlgmr.msra.gmra.mxu3 %vm594_vm0, %v495_v28  ;;  %541 = vperm.xlu1 %1980, %v513_v29  }
  0x77   : > { %531 = vperm.xlu0 %1979, %v511_v30   ;;  %546 = vperm.xlu2 %1981, %v514_v31  }
  0x7c   : > { %1587 = vmatmul.msk.f32.gmra.mxu0 %vm594_vm0, %v489_v32 }
  0x7d   : > { %1594 = vmatmul.msk.f32.gmra.mxu2 %vm594_vm0, %v496_v33  ;;  %1601 = vmatmul.msk.f32.gmra.mxu1 %vm594_vm0, %v489_v32 }
  0x7e   : > { %1608 = vmatmul.msk.f32.gmra.mxu3 %vm594_vm0, %v496_v33  ;;  %586 = vperm.xlu1 %1980, %v522_v34  }
  0x7f   : > { %581 = vperm.xlu0 %1979, %v521_v35   ;;  %551 = vperm.xlu2 %1981, %v515_v36  }
  0x84   : > { %1588 = vmatmul.msk.f32.gmra.mxu0 %vm594_vm0, %v490_v37 }
  0x85   : > { %1595 = vmatmul.msk.f32.gmra.mxu2 %vm594_vm0, %v497_v38  ;;  %1602 = vmatmul.msk.f32.gmra.mxu1 %vm594_vm0, %v490_v37 }
  0x86   : > { %1609 = vmatmul.msk.f32.gmra.mxu3 %vm594_vm0, %v497_v38  ;;  %561 = vperm.xlu1 %1980, %v517_v39  }
  0x87   : > { %556 = vperm.xlu0 %1979, %v516_v40   ;;  %591 = vperm.xlu2 %1981, %v523_v41  }
  0x8c   : > { %1589 = vmatmul.msk.f32.gmra.mxu0 %vm594_vm0, %v491_v42 }
  0x8d   : > { %1596 = vmatmul.msk.f32.gmra.mxu2 %vm594_vm0, %v498_v43  ;;  %1603 = vmatmul.msk.f32.gmra.mxu1 %vm594_vm0, %v491_v42 }
  0x8e   : > { %1610 = vmatmul.msk.f32.gmra.mxu3 %vm594_vm0, %v498_v43  ;;  %576 = vperm.xlu1 %1980, %v520_v45  }
  0x8f   : > { %571 = vperm.xlu0 %1979, %v519_v44   ;;  %566 = vperm.xlu2 %1981, %v518_v46  }
  0x94   : > { %1590 = vmatmul.msk.f32.gmra.mxu0 %vm594_vm0, %v492_v47 }
  0x95   : > { %1597 = vmatmul.msk.f32.gmra.mxu2 %vm594_vm0, %v499_v48  ;;  %1604 = vmatmul.msk.f32.gmra.mxu1 %vm594_vm0, %v492_v47 }
  0x96   : > { %1611 = vmatmul.msk.f32.gmra.mxu3 %vm594_vm0, %v499_v48 }
  0x9c   : > { %1591 = vmatmul.msk.f32.gmra.mxu0 %vm594_vm0, %v493_v49 }
  0x9d   : > { %1598 = vmatmul.msk.f32.gmra.mxu2 %vm594_vm0, %v500_v50  ;;  %1605 = vmatmul.msk.f32.gmra.mxu1 %vm594_vm0, %v493_v49 }
  0x9e   : > { %1612 = vmatmul.msk.f32.gmra.mxu3 %vm594_vm0, %v500_v50 }
  0xa4   : > { %1592 = vmatmul.msk.f32.gmra.mxu0 %vm594_vm0, %v494_v51 }
  0xa5   : > { %1599 = vmatmul.msk.f32.gmra.mxu2 %vm594_vm0, %v501_v52  ;;  %1606 = vmatmul.msk.f32.gmra.mxu1 %vm594_vm0, %v494_v51 }
  0xa6   : > { %1613 = vmatmul.msk.f32.gmra.mxu3 %vm594_vm0, %v501_v52 }
  0xd1   : > { %v2603_v55 = vpop.permute.xlu2 %546 }
  0xd9   : > { %v2607_v58 = vpop.permute.xlu2 %551 }
  0xdd   : > { %v537_v53 = vpop.permute.xlu1 %536  ;;  %v527_v54 = vpop.permute.xlu0 %526 }
  0xe1   : > { %v2613_v1 = vpop.permute.xlu2 %591 }
  0xe8   : > { %v2605_v56 = vpop.permute.xlu1 %541 }
  0xe9   : > { %v532_v57 = vpop.permute.xlu0 %531  ;;  %v567_v18 = vpop.permute.xlu2 %566 }
  0xf0   : > { %v2609_v59 = vpop.permute.xlu1 %586 }
  0xf1   : > { %v654_v60 = vpop.f32.mrf.mxu0  ;;  %v2611_v61 = vpop.permute.xlu0 %581 }
  0xf2   : > { %v655_v62 = vadd.f32 %v654_v60, %v527_v54  ;;  %v713_v63 = vpop.f32.mrf.mxu1 }
  0xf3   : > { %v714_v0 = vadd.f32 %v713_v63, %v527_v54 }
  0xf4   : > { %v755_v2 = vsub.f32 0.0, %v655_v62 }
  0xf5   : > { %v756_v3 = vsub.f32 0.0, %v714_v0 }
  0xf6   : > { %v761_v4 = vmul.f32 1.442695, %v755_v2 }
  0xf7   : > { %v763_v5 = vmul.f32 1.442695, %v756_v3 }
  0xf8   : > { %v675_v6 = vpop.f32.mrf.mxu2  ;;  %1982 = vpow2.f32 %v761_v4  ;;  %v562_v7 = vpop.permute.xlu1 %561 }
  0xf9   : > { %v734_v8 = vpop.f32.mrf.mxu3  ;;  %1984 = vpow2.f32 %v763_v5  ;;  %v676_v9 = vadd.f32 %v675_v6, %v562_v7  ;;  %v657_v11 = vpop.f32.mrf.mxu0 }
  0xfa   : > { %v735_v10 = vadd.f32 %v734_v8, %v562_v7  ;;  %v658_v12 = vadd.f32 %v657_v11, %v532_v57  ;;  %v716_v13 = vpop.f32.mrf.mxu1  ;;  %v2620_v15 = vpop.permute.xlu0 %556 }
  0xfb   : > { %799 = vst [vmem:[%s2617_s30 + $0x70] sm:$0xff] %v676_v9  ;;  %v717_v14 = vadd.f32 %v716_v13, %v532_v57 }
  0xfc   : > { %800 = vst [vmem:[%s2617_s30 + $0x78] sm:$0xff] %v735_v10  ;;  %v757_v16 = vsub.f32 0.0, %v658_v12 }
  0xfd   : > { %v758_v17 = vsub.f32 0.0, %v717_v14 }
  0xfe   : > { %v1983_v19 = vpop.eup %1982  ;;  %v765_v20 = vmul.f32 1.442695, %v757_v16 }
  0xff   : > { %v1985_v21 = vpop.eup %1984  ;;  %v773_v22 = vadd.f32 1.0, %v1983_v19  ;;  %v767_v23 = vmul.f32 1.442695, %v758_v17 }
 0x100   : > { %v678_v24 = vpop.f32.mrf.mxu2  ;;  %v774_v25 = vadd.f32 1.0, %v1985_v21  ;;  %1986 = vpow2.f32 %v765_v20  ;;  %v577_v52 = vpop.permute.xlu1 %576 }
 0x101   : > { %v679_v26 = vadd.f32 %v678_v24, %v567_v18  ;;  %v737_v27 = vpop.f32.mrf.mxu3  ;;  %1988 = vrcp.f32 %v773_v22  ;;  %v660_v29 = vpop.f32.mrf.mxu0 }
 0x102   : > { %v738_v28 = vadd.f32 %v737_v27, %v567_v18  ;;  %1990 = vrcp.f32 %v774_v25  ;;  %v661_v30 = vadd.f32 %v660_v29, %v537_v53  ;;  %v719_v31 = vpop.f32.mrf.mxu1  ;;  %v572_v35 = vpop.permute.xlu0 %571 }
 0x103   : > { %801 = vst [vmem:[%s2617_s30 + $0x80] sm:$0xff] %v679_v26  ;;  %1992 = vpow2.f32 %v767_v23  ;;  %v720_v32 = vadd.f32 %v719_v31, %v537_v53 }
 0x104   : > { %802 = vst [vmem:[%s2617_s30 + $0x88] sm:$0xff] %v738_v28  ;;  %v759_v33 = vsub.f32 0.0, %v661_v30 }
 0x105   : > { %v760_v34 = vsub.f32 0.0, %v720_v32 }
 0x106   : > { %v1987_v36 = vpop.eup %1986  ;;  %v769_v37 = vmul.f32 1.442695, %v759_v33 }
 0x107   : > { %v1989_v38 = vpop.eup %1988  ;;  %v775_v39 = vadd.f32 1.0, %v1987_v36  ;;  %v771_v40 = vmul.f32 1.442695, %v760_v34 }
 0x108   : > { %v681_v41 = vpop.f32.mrf.mxu2  ;;  %v1991_v42 = vpop.eup %1990  ;;  %785 = vst [vmem:[%s2617_s30] sm:$0xff] %v1989_v38  ;;  %1994 = vpow2.f32 %v769_v37 }
 0x109   : > { %v682_v43 = vadd.f32 %v681_v41, %v572_v35  ;;  %v740_v44 = vpop.f32.mrf.mxu3  ;;  %v1993_v45 = vpop.eup %1992  ;;  %786 = vst [vmem:[%s2617_s30 + $0x8] sm:$0xff] %v1991_v42  ;;  %1996 = vrcp.f32 %v775_v39 }
 0x10a   : > { %v741_v46 = vadd.f32 %v740_v44, %v572_v35  ;;  %v663_v47 = vpop.f32.mrf.mxu0  ;;  %v776_v48 = vadd.f32 1.0, %v1993_v45  ;;  %1998 = vpow2.f32 %v771_v40  ;;  %v722_v50 = vpop.f32.mrf.mxu1 }
 0x10b   : > { %803 = vst [vmem:[%s2617_s30 + $0x90] sm:$0xff] %v682_v43  ;;  %v664_v49 = vadd.f32 %v663_v47, %v2605_v56  ;;  %v723_v51 = vadd.f32 %v722_v50, %v2605_v56 }
 0x10c   : > { %804 = vst [vmem:[%s2617_s30 + $0x98] sm:$0xff] %v741_v46  ;;  %2000 = vrcp.f32 %v776_v48 }
 0x10d   : > { %791 = vst [vmem:[%s2617_s30 + $0x30] sm:$0xff] %v664_v49 }
 0x10e   : > { %792 = vst [vmem:[%s2617_s30 + $0x38] sm:$0xff] %v723_v51  ;;  %v1995_v53 = vpop.eup %1994 }
 0x10f   : > { %v1997_v54 = vpop.eup %1996  ;;  %v777_v57 = vadd.f32 1.0, %v1995_v53 }
 0x110   : > { %v684_v60 = vpop.f32.mrf.mxu2  ;;  %v1999_v62 = vpop.eup %1998  ;;  %787 = vst [vmem:[%s2617_s30 + $0x10] sm:$0xff] %v1997_v54 }
 0x111   : > { %v685_v63 = vadd.f32 %v684_v60, %v577_v52  ;;  %v743_v0 = vpop.f32.mrf.mxu3  ;;  %2002 = vrcp.f32 %v777_v57  ;;  %v778_v56 = vadd.f32 1.0, %v1999_v62 }
 0x112   : > { %v744_v2 = vadd.f32 %v743_v0, %v577_v52  ;;  %v666_v3 = vpop.f32.mrf.mxu0  ;;  %v2001_v4 = vpop.eup %2000 }
 0x113   : > { %805 = vst [vmem:[%s2617_s30 + $0xa0] sm:$0xff] %v685_v63  ;;  %v667_v5 = vadd.f32 %v666_v3, %v2603_v55  ;;  %v725_v6 = vpop.f32.mrf.mxu1  ;;  %2004 = vrcp.f32 %v778_v56 }
 0x114   : > { %788 = vst [vmem:[%s2617_s30 + $0x18] sm:$0xff] %v2001_v4  ;;  %v726_v7 = vadd.f32 %v725_v6, %v2603_v55 }
 0x115   : > { %806 = vst [vmem:[%s2617_s30 + $0xa8] sm:$0xff] %v744_v2 }
 0x116   : > { %793 = vst [vmem:[%s2617_s30 + $0x40] sm:$0xff] %v667_v5 }
 0x117   : > { %794 = vst [vmem:[%s2617_s30 + $0x48] sm:$0xff] %v726_v7  ;;  %v2003_v8 = vpop.eup %2002 }
 0x118   : > { %v687_v9 = vpop.f32.mrf.mxu2  ;;  %789 = vst [vmem:[%s2617_s30 + $0x20] sm:$0xff] %v2003_v8 }
 0x119   : > { %v688_v10 = vadd.f32 %v687_v9, %v2611_v61  ;;  %v746_v11 = vpop.f32.mrf.mxu3  ;;  %v2005_v12 = vpop.eup %2004 }
 0x11a   : > { %v747_v13 = vadd.f32 %v746_v11, %v2611_v61  ;;  %v669_v14 = vpop.f32.mrf.mxu0  ;;  %790 = vst [vmem:[%s2617_s30 + $0x28] sm:$0xff] %v2005_v12 }
 0x11b   : > { %v807_v16 = vmul.f32 1.442695, %v688_v10  ;;  %v670_v17 = vadd.f32 %v669_v14, %v2607_v58  ;;  %v728_v55 = vpop.f32.mrf.mxu1 }
 0x11c   : > { %v809_v18 = vmul.f32 1.442695, %v747_v13  ;;  %v729_v19 = vadd.f32 %v728_v55, %v2607_v58 }
 0x11d   : > { %2006 = vpow2.f32 %v807_v16  ;;  %795 = vst [vmem:[%s2617_s30 + $0x50] sm:$0xff] %v670_v17 }
 0x11e   : > { %2008 = vpow2.f32 %v809_v18  ;;  %796 = vst [vmem:[%s2617_s30 + $0x58] sm:$0xff] %v729_v19 }
 0x120   : > { %v690_v20 = vpop.f32.mrf.mxu2 }
 0x121   : > { %v691_v21 = vadd.f32 %v690_v20, %v2609_v59  ;;  %v749_v61 = vpop.f32.mrf.mxu3 }
 0x122   : > { %v750_v22 = vadd.f32 %v749_v61, %v2609_v59  ;;  %v672_v23 = vpop.f32.mrf.mxu0 }
 0x123   : > { %v2007_v24 = vpop.eup %2006  ;;  %v811_v25 = vmul.f32 1.442695, %v691_v21  ;;  %v673_v26 = vadd.f32 %v672_v23, %v2620_v15  ;;  %v731_v27 = vpop.f32.mrf.mxu1 }
 0x124   : > { %v2009_v58 = vpop.eup %2008  ;;  %819 = vst [vmem:[%s2617_s30 + $0xb0] sm:$0xff] %v2007_v24  ;;  %v813_v28 = vmul.f32 1.442695, %v750_v22  ;;  %v732_v29 = vadd.f32 %v731_v27, %v2620_v15 }
 0x125   : > { %820 = vst [vmem:[%s2617_s30 + $0xb8] sm:$0xff] %v2009_v58  ;;  %2010 = vpow2.f32 %v811_v25 }
 0x126   : > { %2012 = vpow2.f32 %v813_v28  ;;  %797 = vst [vmem:[%s2617_s30 + $0x60] sm:$0xff] %v673_v26 }
 0x127   : > { %798 = vst [vmem:[%s2617_s30 + $0x68] sm:$0xff] %v732_v29 }
 0x128   : > { %v693_v59 = vpop.f32.mrf.mxu2 }
 0x129   : > { %v694_v30 = vadd.f32 %v693_v59, %v2613_v1  ;;  %v752_v31 = vpop.f32.mrf.mxu3 }
 0x12a   : > { %v753_v32 = vadd.f32 %v752_v31, %v2613_v1 }
 0x12b   : > { %v2011_v33 = vpop.eup %2010  ;;  %v815_v34 = vmul.f32 1.442695, %v694_v30 }
 0x12c   : > { %v2013_v35 = vpop.eup %2012  ;;  %821 = vst [vmem:[%s2617_s30 + $0xc0] sm:$0xff] %v2011_v33  ;;  %v817_v36 = vmul.f32 1.442695, %v753_v32 }
 0x12d   : > { %822 = vst [vmem:[%s2617_s30 + $0xc8] sm:$0xff] %v2013_v35  ;;  %2014 = vpow2.f32 %v815_v34 }
 0x12e   : > { %2016 = vpow2.f32 %v817_v36 }
 0x131   : > { %831 = sbr.rel (!%p2371_p6) target bundleno = 521 (0x209), region = 102 }
 0x133   : > { %v2015_v15 = vpop.eup %2014 }
 0x134   : > { %v2017_v37 = vpop.eup %2016  ;;  %823 = vst [vmem:[%s2617_s30 + $0xd0] sm:$0xff] %v2015_v15 }
 0x135   : > { %824 = vst [vmem:[%s2617_s30 + $0xd8] sm:$0xff] %v2017_v37 }
 0x136   : > { %s3209_s21 = smov (!%p834_p11, %s833_s21), 2 }
 0x137   : > { %s836_s6 = smul.u32 112, %s3209_s21  ;;  %s2672_s25 = sshll.u32 %s3209_s21, 3 }
 0x139   : > { %p1618_p12 = scmp.eq.s32.totalorder %s836_s6, 0 }
 0x13a   : > { %p846_p6 = scmp.lt.u32.totalorder (!%p1618_p12), %s2672_s25, 8 }
 0x13b   : > { %845 = sbr.rel (%p1618_p12) target bundleno = 521 (0x209), region = 106 }
 0x140   : > { %849 = sbr.rel (%p846_p6) target bundleno = 499 (0x1f3), region = 110  ;;  %s2676_s14 = sand.u32 (!%p846_p6), 7, %s2672_s25  }
 0x141   : > { %p892_p13 = scmp.eq.s32.totalorder (!%p846_p6), %s2676_s14, 0  ;;  %p1619_p0 = scmp.ne.s32.totalorder (!%p846_p6), %s2676_s14, 0 }
 0x145   : > { %895 = sbr.rel (%p1619_p0) target bundleno = 403 (0x193), region = 125  ;;  %s896_s15 = sshrl.u32 (!%p1619_p0), %s2672_s25, 3 }
 0x146   : > { %s2683_s23 = sshrl.u32 (!%p1619_p0), %s896_s15, 2 }
 0x147   : > { %p1620_p1 = scmp.le.s32.totalorder (!%p1619_p0), %s2683_s23, 0 }
 0x14a   : > { %1468 = sbr.rel (%p1620_p1) target bundleno = 379 (0x17b), region = 273  ;;  %s3170_s26 = smov (!%p1620_p1), %s2670_s5 }
 0x14b   : > { %s3171_s28 = smov (!%p1620_p1), %s2617_s30  ;;  %s2692_s10 = smov (!%p1620_p1), 0  }
 0x14c   : > { %s2694_s8 = smov (!%p1620_p1), 0  }
 0x14f LB: >> { %v907_v1 = vld [vmem:[%s2240_s28] sm:$0xff]  ;;  %v909_v38 = vld [vmem:[%s2240_s28 + $0x8] sm:$0xff]  ;;  %v911_v39 = vld [vmem:[%s2240_s28 + $0x10] sm:$0xff]  ;;  %s1019_s9 = sadd.s32 1, %s2244_s10  ;;  %s901_s8 = sadd.s32 1, %s2248_s8   ;;  %s2248_s8 = sphi %s2694_s8, %s901_s8   ;;  %s2244_s10 = sphi %s2692_s10, %s3174_s10   ;;  %s2240_s28 = sphi %s3171_s28, %s3173_s28   ;;  %s2236_s26 = sphi %s3170_s26, %s3172_s26  }
 0x150   : >> { %908 = vst [vmem:[%s2236_s26] sm:$0xff] %v907_v1  ;;  %v917_v40 = vld [vmem:[%s2240_s28 + $0x18] sm:$0xff]  ;;  %v919_v41 = vld [vmem:[%s2240_s28 + $0x20] sm:$0xff]  ;;  %p1020_p2 = scmp.ge.s32.totalorder %s1019_s9, %s2683_s23  ;;  %v925_v42 = vld [vmem:[%s2240_s28 + $0x28] sm:$0xff]  ;;  %p900_p3 = scmp.ge.s32.totalorder %s901_s8, %s2683_s23 }
 0x151   : >> { %910 = vst [vmem:[%s2236_s26 + $0x8] sm:$0xff] %v909_v38  ;;  %v927_v43 = vld [vmem:[%s2240_s28 + $0x30] sm:$0xff]  ;;  %v933_v44 = vld [vmem:[%s2240_s28 + $0x38] sm:$0xff]  ;;  %v935_v45 = vld [vmem:[%s2240_s28 + $0x40] sm:$0xff] }
 0x152   : >> { %912 = vst [vmem:[%s2236_s26 + $0x10] sm:$0xff] %v911_v39  ;;  %s3211_s9 = smov (%p1020_p2, %s1019_s9), 0  ;;  %v941_v46 = vld [vmem:[%s2240_s28 + $0x48] sm:$0xff]  ;;  %v943_v47 = vld [vmem:[%s2240_s28 + $0x50] sm:$0xff]  ;;  %v949_v48 = vld [vmem:[%s2240_s28 + $0x58] sm:$0xff] }
 0x153   : >> { %916 = vst [vmem:[%s2236_s26 + $0x18] sm:$0xff] %v911_v39  ;;  %s1621_s24 = sshll.u32 %s3211_s9, 5  ;;  %v951_v49 = vld [vmem:[%s2240_s28 + $0x60] sm:$0xff]  ;;  %v957_v50 = vld [vmem:[%s2240_s28 + $0x68] sm:$0xff]  ;;  %v959_v51 = vld [vmem:[%s2240_s28 + $0x70] sm:$0xff]  ;;  %s3174_s10 = smov %s3211_s9 }
 0x154   : >> { %918 = vst [vmem:[%s2236_s26 + $0x20] sm:$0xff] %v917_v40  ;;  %s2727_s12 = scalar_lea.vmem %s2617_s30, %s1621_s24 [#allocation3]   ;;  %s2730_s7 = scalar_lea.vmem %s2670_s5, %s1621_s24   ;;  %v965_v52 = vld [vmem:[%s2240_s28 + $0x78] sm:$0xff]  ;;  %v967_v53 = vld [vmem:[%s2240_s28 + $0x80] sm:$0xff]  ;;  %v973_v54 = vld [vmem:[%s2240_s28 + $0x88] sm:$0xff] }
 0x155   : >> { %920 = vst [vmem:[%s2236_s26 + $0x28] sm:$0xff] %v919_v41  ;;  %v975_v57 = vld [vmem:[%s2240_s28 + $0x90] sm:$0xff]  ;;  %v981_v60 = vld [vmem:[%s2240_s28 + $0x98] sm:$0xff]  ;;  %v983_v62 = vld [vmem:[%s2240_s28 + $0xa0] sm:$0xff] }
 0x156   : >> { %924 = vst [vmem:[%s2236_s26 + $0x30] sm:$0xff] %v919_v41  ;;  %v989_v63 = vld [vmem:[%s2240_s28 + $0xa8] sm:$0xff]  ;;  %v991_v0 = vld [vmem:[%s2240_s28 + $0xb0] sm:$0xff]  ;;  %v997_v56 = vld [vmem:[%s2240_s28 + $0xb8] sm:$0xff] }
 0x157   : >> { %926 = vst [vmem:[%s2236_s26 + $0x38] sm:$0xff] %v925_v42  ;;  %v999_v2 = vld [vmem:[%s2240_s28 + $0xc0] sm:$0xff]  ;;  %v1005_v3 = vld [vmem:[%s2240_s28 + $0xc8] sm:$0xff]  ;;  %v1007_v4 = vld [vmem:[%s2240_s28 + $0xd0] sm:$0xff] }
 0x158   : >> { %928 = vst [vmem:[%s2236_s26 + $0x40] sm:$0xff] %v927_v43  ;;  %v1013_v5 = vld [vmem:[%s2240_s28 + $0xd8] sm:$0xff]  ;;  %v1015_v6 = vld [vmem:[%s2240_s28 + $0xe0] sm:$0xff]  ;;  %v1017_v7 = vld [vmem:[%s2240_s28 + $0xe8] sm:$0xff]  ;;  %s3173_s28 = smov %s2727_s12 }
 0x159   : >> { %932 = vst [vmem:[%s2236_s26 + $0x48] sm:$0xff] %v927_v43 }
 0x15a   : >> { %934 = vst [vmem:[%s2236_s26 + $0x50] sm:$0xff] %v933_v44 }
 0x15b   : >> { %936 = vst [vmem:[%s2236_s26 + $0x58] sm:$0xff] %v935_v45 }
 0x15c   : >> { %940 = vst [vmem:[%s2236_s26 + $0x60] sm:$0xff] %v935_v45 }
 0x15d   : >> { %942 = vst [vmem:[%s2236_s26 + $0x68] sm:$0xff] %v941_v46 }
 0x15e   : >> { %944 = vst [vmem:[%s2236_s26 + $0x70] sm:$0xff] %v943_v47 }
 0x15f   : >> { %948 = vst [vmem:[%s2236_s26 + $0x78] sm:$0xff] %v943_v47 }
 0x160   : >> { %950 = vst [vmem:[%s2236_s26 + $0x80] sm:$0xff] %v949_v48 }
 0x161   : >> { %952 = vst [vmem:[%s2236_s26 + $0x88] sm:$0xff] %v951_v49 }
 0x162   : >> { %956 = vst [vmem:[%s2236_s26 + $0x90] sm:$0xff] %v951_v49 }
 0x163   : >> { %958 = vst [vmem:[%s2236_s26 + $0x98] sm:$0xff] %v957_v50 }
 0x164   : >> { %960 = vst [vmem:[%s2236_s26 + $0xa0] sm:$0xff] %v959_v51 }
 0x165   : >> { %964 = vst [vmem:[%s2236_s26 + $0xa8] sm:$0xff] %v959_v51 }
 0x166   : >> { %966 = vst [vmem:[%s2236_s26 + $0xb0] sm:$0xff] %v965_v52 }
 0x167   : >> { %968 = vst [vmem:[%s2236_s26 + $0xb8] sm:$0xff] %v967_v53 }
 0x168   : >> { %972 = vst [vmem:[%s2236_s26 + $0xc0] sm:$0xff] %v967_v53 }
 0x169   : >> { %974 = vst [vmem:[%s2236_s26 + $0xc8] sm:$0xff] %v973_v54 }
 0x16a   : >> { %976 = vst [vmem:[%s2236_s26 + $0xd0] sm:$0xff] %v975_v57 }
 0x16b   : >> { %980 = vst [vmem:[%s2236_s26 + $0xd8] sm:$0xff] %v975_v57 }
 0x16c   : >> { %982 = vst [vmem:[%s2236_s26 + $0xe0] sm:$0xff] %v981_v60 }
 0x16d   : >> { %984 = vst [vmem:[%s2236_s26 + $0xe8] sm:$0xff] %v983_v62 }
 0x16e   : >> { %988 = vst [vmem:[%s2236_s26 + $0xf0] sm:$0xff] %v983_v62 }
 0x16f   : >> { %990 = vst [vmem:[%s2236_s26 + $0xf8] sm:$0xff] %v989_v63 }
 0x170   : >> { %992 = vst [vmem:[%s2236_s26 + $0x100] sm:$0xff] %v991_v0 }
 0x171   : >> { %996 = vst [vmem:[%s2236_s26 + $0x108] sm:$0xff] %v991_v0 }
 0x172   : >> { %998 = vst [vmem:[%s2236_s26 + $0x110] sm:$0xff] %v997_v56 }
 0x173   : >> { %1000 = vst [vmem:[%s2236_s26 + $0x118] sm:$0xff] %v999_v2 }
 0x174   : >> { %1004 = vst [vmem:[%s2236_s26 + $0x120] sm:$0xff] %v999_v2 }
 0x175   : >> { %1006 = vst [vmem:[%s2236_s26 + $0x128] sm:$0xff] %v1005_v3 }
 0x176   : >> { %1008 = vst [vmem:[%s2236_s26 + $0x130] sm:$0xff] %v1007_v4  ;;  %903 = sbr.rel (!%p900_p3) target bundleno = 335 (0x14f), region = 279 }
 0x177   : >> { %1012 = vst [vmem:[%s2236_s26 + $0x138] sm:$0xff] %v1007_v4 }
 0x178   : >> { %1014 = vst [vmem:[%s2236_s26 + $0x140] sm:$0xff] %v1013_v5 }
 0x179   : >> { %1016 = vst [vmem:[%s2236_s26 + $0x148] sm:$0xff] %v1015_v6 }
 0x17a   : >> { %1018 = vst [vmem:[%s2236_s26 + $0x150] sm:$0xff] %v1017_v7  ;;  %s3172_s26 = smov %s2730_s7 }
 0x17b PF: > { %s2804_s21 = sand.u32 3, %s896_s15   ;;  %s1647_s29 = sshll.u32 %s2683_s23, 5 }
 0x17c   : > { %s2808_s11 = scalar_lea.vmem %s2617_s30, %s1647_s29 [#allocation3]   ;;  %s2811_s22 = scalar_lea.vmem %s2670_s5, %s1647_s29  }
 0x17d   : > { %p1626_p4 = scmp.le.s32.totalorder %s2804_s21, 0 }
 0x17e   : > { %s3175_s4 = smov (!%p1626_p4), %s2811_s22  ;;  %s3176_s6 = smov (!%p1626_p4), %s2808_s11 }
 0x17f   : > { %1482 = sbr.rel (%p1626_p4) target bundleno = 403 (0x193), region = 284  ;;  %s2820_s26 = smov (!%p1626_p4), 0  }
 0x180   : > { %s2822_s28 = smov (!%p1626_p4), 0  }
 0x184 LB: >> { %v1042_v8 = vld [vmem:[%s2256_s6] sm:$0xff]  ;;  %v1044_v9 = vld [vmem:[%s2256_s6 + $0x10] sm:$0xff]  ;;  %s1070_s15 = sadd.s32 1, %s2260_s26  ;;  %s1036_s28 = sadd.s32 1, %s2264_s28   ;;  %s2264_s28 = sphi %s2822_s28, %s1036_s28   ;;  %s2260_s26 = sphi %s2820_s26, %s3179_s26   ;;  %s2256_s6 = sphi %s3176_s6, %s3178_s6   ;;  %s2252_s4 = sphi %s3175_s4, %s3177_s4  }
 0x185   : >> { %v1046_v10 = vld [vmem:[%s2256_s6 + $0x20] sm:$0xff]  ;;  %1043 = vst [vmem:[%s2252_s4] sm:$0xff] %v1042_v8  ;;  %v1048_v11 = vld [vmem:[%s2256_s6 + $0x30] sm:$0xff]  ;;  %p1071_p5 = scmp.ge.s32.totalorder %s1070_s15, %s2804_s21  ;;  %p1035_p7 = scmp.ge.s32.totalorder %s1036_s28, %s2804_s21 }
 0x186   : >> { %1045 = vst [vmem:[%s2252_s4 + $0x18] sm:$0xff] %v1044_v9  ;;  %v1050_v12 = vld [vmem:[%s2256_s6 + $0x40] sm:$0xff]  ;;  %v1052_v13 = vld [vmem:[%s2256_s6 + $0x50] sm:$0xff] }
 0x187   : >> { %1047 = vst [vmem:[%s2252_s4 + $0x30] sm:$0xff] %v1046_v10  ;;  %s3213_s15 = smov (%p1071_p5, %s1070_s15), 0  ;;  %v1054_v14 = vld [vmem:[%s2256_s6 + $0x60] sm:$0xff]  ;;  %v1056_v16 = vld [vmem:[%s2256_s6 + $0x70] sm:$0xff] }
 0x188   : >> { %1049 = vst [vmem:[%s2252_s4 + $0x48] sm:$0xff] %v1048_v11  ;;  %s1627_s23 = sshll.u32 %s3213_s15, 3  ;;  %v1058_v17 = vld [vmem:[%s2256_s6 + $0x80] sm:$0xff]  ;;  %v1060_v55 = vld [vmem:[%s2256_s6 + $0x90] sm:$0xff]  ;;  %s3179_s26 = smov %s3213_s15 }
 0x189   : >> { %1051 = vst [vmem:[%s2252_s4 + $0x60] sm:$0xff] %v1050_v12  ;;  %s1075_s10 = scalar_lea.vmem %s2808_s11, %s1627_s23 [#allocation3]   ;;  %s1076_s8 = scalar_lea.vmem %s2811_s22, %s1627_s23   ;;  %v1062_v18 = vld [vmem:[%s2256_s6 + $0xa0] sm:$0xff]  ;;  %v1064_v19 = vld [vmem:[%s2256_s6 + $0xb0] sm:$0xff] }
 0x18a   : >> { %1053 = vst [vmem:[%s2252_s4 + $0x78] sm:$0xff] %v1052_v13  ;;  %v1066_v20 = vld [vmem:[%s2256_s6 + $0xc0] sm:$0xff]  ;;  %v1068_v21 = vld [vmem:[%s2256_s6 + $0xd0] sm:$0xff]  ;;  %s3178_s6 = smov %s1075_s10 }
 0x18b   : >> { %1055 = vst [vmem:[%s2252_s4 + $0x90] sm:$0xff] %v1054_v14 }
 0x18c   : >> { %1057 = vst [vmem:[%s2252_s4 + $0xa8] sm:$0xff] %v1056_v16 }
 0x18d   : >> { %1059 = vst [vmem:[%s2252_s4 + $0xc0] sm:$0xff] %v1058_v17 }
 0x18e   : >> { %1061 = vst [vmem:[%s2252_s4 + $0xd8] sm:$0xff] %v1060_v55  ;;  %1038 = sbr.rel (!%p1035_p7) target bundleno = 388 (0x184), region = 290 }
 0x18f   : >> { %1063 = vst [vmem:[%s2252_s4 + $0xf0] sm:$0xff] %v1062_v18 }
 0x190   : >> { %1065 = vst [vmem:[%s2252_s4 + $0x108] sm:$0xff] %v1064_v19 }
 0x191   : >> { %1067 = vst [vmem:[%s2252_s4 + $0x120] sm:$0xff] %v1066_v20 }
 0x192   : >> { %1069 = vst [vmem:[%s2252_s4 + $0x138] sm:$0xff] %v1068_v21  ;;  %s3177_s4 = smov %s1076_s8 }
 0x193 PF: > { %1079 = sbr.rel (%p892_p13) target bundleno = 499 (0x1f3), region = 143  ;;  %s1081_s9 = ssub.s32 (!%p892_p13), %s2672_s25, %s2676_s14 }
 0x194   : > { %s1085_s24 = sshrl.u32 (!%p892_p13), %s2672_s25, 3  ;;  %s2881_s12 = scalar_lea.vmem (!%p892_p13), %s2617_s30, %s1081_s9 [#allocation3] }
 0x195   : > { %s2884_s7 = scalar_lea.vmem (!%p892_p13), %s2670_s5, %s1081_s9  ;;  %s2888_s29 = sshrl.u32 (!%p892_p13), %s1085_s24, 2 }
 0x196   : > { %p1629_p8 = scmp.le.s32.totalorder (!%p892_p13), %s2888_s29, 0 }
 0x198   : > { %1496 = sbr.rel (%p1629_p8) target bundleno = 457 (0x1c9), region = 295  ;;  %s3180_s21 = smov (!%p1629_p8), %s2670_s5 }
 0x199   : > { %s3181_s11 = smov (!%p1629_p8), %s2617_s30  ;;  %s2897_s22 = smov (!%p1629_p8), 0  }
 0x19a   : > { %s2899_s4 = smov (!%p1629_p8), 0  }
 0x19d LB: >> { %v1096_v61 = vld [vmem:[%s2272_s11] sm:$0xff]  ;;  %v1098_v22 = vld [vmem:[%s2272_s11 + $0x8] sm:$0xff]  ;;  %v1100_v23 = vld [vmem:[%s2272_s11 + $0x10] sm:$0xff]  ;;  %s1208_s6 = sadd.s32 1, %s2276_s22  ;;  %s1090_s4 = sadd.s32 1, %s2280_s4   ;;  %s2280_s4 = sphi %s2899_s4, %s1090_s4   ;;  %s2276_s22 = sphi %s2897_s22, %s3184_s22   ;;  %s2272_s11 = sphi %s3181_s11, %s3183_s11   ;;  %s2268_s21 = sphi %s3180_s21, %s3182_s21  }
 0x19e   : >> { %1097 = vst [vmem:[%s2268_s21] sm:$0xff] %v1096_v61  ;;  %v1106_v24 = vld [vmem:[%s2272_s11 + $0x18] sm:$0xff]  ;;  %v1108_v25 = vld [vmem:[%s2272_s11 + $0x20] sm:$0xff]  ;;  %p1209_p9 = scmp.ge.s32.totalorder %s1208_s6, %s2888_s29  ;;  %v1114_v26 = vld [vmem:[%s2272_s11 + $0x28] sm:$0xff]  ;;  %p1089_p10 = scmp.ge.s32.totalorder %s1090_s4, %s2888_s29 }
 0x19f   : >> { %1099 = vst [vmem:[%s2268_s21 + $0x8] sm:$0xff] %v1098_v22  ;;  %v1116_v27 = vld [vmem:[%s2272_s11 + $0x30] sm:$0xff]  ;;  %v1122_v58 = vld [vmem:[%s2272_s11 + $0x38] sm:$0xff]  ;;  %v1124_v28 = vld [vmem:[%s2272_s11 + $0x40] sm:$0xff] }
 0x1a0   : >> { %1101 = vst [vmem:[%s2268_s21 + $0x10] sm:$0xff] %v1100_v23  ;;  %s3215_s6 = smov (%p1209_p9, %s1208_s6), 0  ;;  %v1130_v29 = vld [vmem:[%s2272_s11 + $0x48] sm:$0xff]  ;;  %v1132_v59 = vld [vmem:[%s2272_s11 + $0x50] sm:$0xff]  ;;  %v1138_v30 = vld [vmem:[%s2272_s11 + $0x58] sm:$0xff] }
 0x1a1   : >> { %1105 = vst [vmem:[%s2268_s21 + $0x18] sm:$0xff] %v1100_v23  ;;  %s1630_s26 = sshll.u32 %s3215_s6, 5  ;;  %v1140_v31 = vld [vmem:[%s2272_s11 + $0x60] sm:$0xff]  ;;  %v1146_v32 = vld [vmem:[%s2272_s11 + $0x68] sm:$0xff]  ;;  %v1148_v33 = vld [vmem:[%s2272_s11 + $0x70] sm:$0xff]  ;;  %s3184_s22 = smov %s3215_s6 }
 0x1a2   : >> { %1107 = vst [vmem:[%s2268_s21 + $0x20] sm:$0xff] %v1106_v24  ;;  %s2932_s28 = scalar_lea.vmem %s2617_s30, %s1630_s26 [#allocation3]   ;;  %s2935_s15 = scalar_lea.vmem %s2670_s5, %s1630_s26   ;;  %v1154_v34 = vld [vmem:[%s2272_s11 + $0x78] sm:$0xff]  ;;  %v1156_v35 = vld [vmem:[%s2272_s11 + $0x80] sm:$0xff]  ;;  %v1162_v36 = vld [vmem:[%s2272_s11 + $0x88] sm:$0xff] }
 0x1a3   : >> { %1109 = vst [vmem:[%s2268_s21 + $0x28] sm:$0xff] %v1108_v25  ;;  %v1164_v15 = vld [vmem:[%s2272_s11 + $0x90] sm:$0xff]  ;;  %v1170_v37 = vld [vmem:[%s2272_s11 + $0x98] sm:$0xff]  ;;  %v1172_v1 = vld [vmem:[%s2272_s11 + $0xa0] sm:$0xff] }
 0x1a4   : >> { %1113 = vst [vmem:[%s2268_s21 + $0x30] sm:$0xff] %v1108_v25  ;;  %v1178_v38 = vld [vmem:[%s2272_s11 + $0xa8] sm:$0xff]  ;;  %v1180_v39 = vld [vmem:[%s2272_s11 + $0xb0] sm:$0xff]  ;;  %v1186_v40 = vld [vmem:[%s2272_s11 + $0xb8] sm:$0xff] }
 0x1a5   : >> { %1115 = vst [vmem:[%s2268_s21 + $0x38] sm:$0xff] %v1114_v26  ;;  %v1188_v41 = vld [vmem:[%s2272_s11 + $0xc0] sm:$0xff]  ;;  %v1194_v42 = vld [vmem:[%s2272_s11 + $0xc8] sm:$0xff]  ;;  %v1196_v43 = vld [vmem:[%s2272_s11 + $0xd0] sm:$0xff] }
 0x1a6   : >> { %1117 = vst [vmem:[%s2268_s21 + $0x40] sm:$0xff] %v1116_v27  ;;  %v1202_v44 = vld [vmem:[%s2272_s11 + $0xd8] sm:$0xff]  ;;  %v1204_v45 = vld [vmem:[%s2272_s11 + $0xe0] sm:$0xff]  ;;  %v1206_v46 = vld [vmem:[%s2272_s11 + $0xe8] sm:$0xff]  ;;  %s3183_s11 = smov %s2932_s28 }
 0x1a7   : >> { %1121 = vst [vmem:[%s2268_s21 + $0x48] sm:$0xff] %v1116_v27 }
 0x1a8   : >> { %1123 = vst [vmem:[%s2268_s21 + $0x50] sm:$0xff] %v1122_v58 }
 0x1a9   : >> { %1125 = vst [vmem:[%s2268_s21 + $0x58] sm:$0xff] %v1124_v28 }
 0x1aa   : >> { %1129 = vst [vmem:[%s2268_s21 + $0x60] sm:$0xff] %v1124_v28 }
 0x1ab   : >> { %1131 = vst [vmem:[%s2268_s21 + $0x68] sm:$0xff] %v1130_v29 }
 0x1ac   : >> { %1133 = vst [vmem:[%s2268_s21 + $0x70] sm:$0xff] %v1132_v59 }
 0x1ad   : >> { %1137 = vst [vmem:[%s2268_s21 + $0x78] sm:$0xff] %v1132_v59 }
 0x1ae   : >> { %1139 = vst [vmem:[%s2268_s21 + $0x80] sm:$0xff] %v1138_v30 }
 0x1af   : >> { %1141 = vst [vmem:[%s2268_s21 + $0x88] sm:$0xff] %v1140_v31 }
 0x1b0   : >> { %1145 = vst [vmem:[%s2268_s21 + $0x90] sm:$0xff] %v1140_v31 }
 0x1b1   : >> { %1147 = vst [vmem:[%s2268_s21 + $0x98] sm:$0xff] %v1146_v32 }
 0x1b2   : >> { %1149 = vst [vmem:[%s2268_s21 + $0xa0] sm:$0xff] %v1148_v33 }
 0x1b3   : >> { %1153 = vst [vmem:[%s2268_s21 + $0xa8] sm:$0xff] %v1148_v33 }
 0x1b4   : >> { %1155 = vst [vmem:[%s2268_s21 + $0xb0] sm:$0xff] %v1154_v34 }
 0x1b5   : >> { %1157 = vst [vmem:[%s2268_s21 + $0xb8] sm:$0xff] %v1156_v35 }
 0x1b6   : >> { %1161 = vst [vmem:[%s2268_s21 + $0xc0] sm:$0xff] %v1156_v35 }
 0x1b7   : >> { %1163 = vst [vmem:[%s2268_s21 + $0xc8] sm:$0xff] %v1162_v36 }
 0x1b8   : >> { %1165 = vst [vmem:[%s2268_s21 + $0xd0] sm:$0xff] %v1164_v15 }
 0x1b9   : >> { %1169 = vst [vmem:[%s2268_s21 + $0xd8] sm:$0xff] %v1164_v15 }
 0x1ba   : >> { %1171 = vst [vmem:[%s2268_s21 + $0xe0] sm:$0xff] %v1170_v37 }
 0x1bb   : >> { %1173 = vst [vmem:[%s2268_s21 + $0xe8] sm:$0xff] %v1172_v1 }
 0x1bc   : >> { %1177 = vst [vmem:[%s2268_s21 + $0xf0] sm:$0xff] %v1172_v1 }
 0x1bd   : >> { %1179 = vst [vmem:[%s2268_s21 + $0xf8] sm:$0xff] %v1178_v38 }
 0x1be   : >> { %1181 = vst [vmem:[%s2268_s21 + $0x100] sm:$0xff] %v1180_v39 }
 0x1bf   : >> { %1185 = vst [vmem:[%s2268_s21 + $0x108] sm:$0xff] %v1180_v39 }
 0x1c0   : >> { %1187 = vst [vmem:[%s2268_s21 + $0x110] sm:$0xff] %v1186_v40 }
 0x1c1   : >> { %1189 = vst [vmem:[%s2268_s21 + $0x118] sm:$0xff] %v1188_v41 }
 0x1c2   : >> { %1193 = vst [vmem:[%s2268_s21 + $0x120] sm:$0xff] %v1188_v41 }
 0x1c3   : >> { %1195 = vst [vmem:[%s2268_s21 + $0x128] sm:$0xff] %v1194_v42 }
 0x1c4   : >> { %1197 = vst [vmem:[%s2268_s21 + $0x130] sm:$0xff] %v1196_v43  ;;  %1092 = sbr.rel (!%p1089_p10) target bundleno = 413 (0x19d), region = 301 }
 0x1c5   : >> { %1201 = vst [vmem:[%s2268_s21 + $0x138] sm:$0xff] %v1196_v43 }
 0x1c6   : >> { %1203 = vst [vmem:[%s2268_s21 + $0x140] sm:$0xff] %v1202_v44 }
 0x1c7   : >> { %1205 = vst [vmem:[%s2268_s21 + $0x148] sm:$0xff] %v1204_v45 }
 0x1c8   : >> { %1207 = vst [vmem:[%s2268_s21 + $0x150] sm:$0xff] %v1206_v46  ;;  %s3182_s21 = smov %s2935_s15 }
 0x1c9 PF: > { %s3009_s23 = sand.u32 3, %s1085_s24   ;;  %s1649_s10 = sshll.u32 %s2888_s29, 5 }
 0x1ca   : > { %s3013_s8 = scalar_lea.vmem %s2617_s30, %s1649_s10 [#allocation3]   ;;  %s3016_s9 = scalar_lea.vmem %s2670_s5, %s1649_s10  }
 0x1cb   : > { %p1635_p11 = scmp.le.s32.totalorder %s3009_s23, 0 }
 0x1cc   : > { %s3185_s4 = smov (!%p1635_p11), %s3016_s9  ;;  %s3186_s21 = smov (!%p1635_p11), %s3013_s8 }
 0x1cd   : > { %1510 = sbr.rel (%p1635_p11) target bundleno = 481 (0x1e1), region = 306  ;;  %s3025_s11 = smov (!%p1635_p11), 0  }
 0x1ce   : > { %s3027_s22 = smov (!%p1635_p11), 0  }
 0x1d2 LB: >> { %v1231_v47 = vld [vmem:[%s2288_s21] sm:$0xff]  ;;  %v1233_v48 = vld [vmem:[%s2288_s21 + $0x10] sm:$0xff]  ;;  %s1259_s24 = sadd.s32 1, %s2292_s11  ;;  %s1225_s22 = sadd.s32 1, %s2296_s22   ;;  %s2296_s22 = sphi %s3027_s22, %s1225_s22   ;;  %s2292_s11 = sphi %s3025_s11, %s3189_s11   ;;  %s2288_s21 = sphi %s3186_s21, %s3188_s21   ;;  %s2284_s4 = sphi %s3185_s4, %s3187_s4  }
 0x1d3   : >> { %v1235_v49 = vld [vmem:[%s2288_s21 + $0x20] sm:$0xff]  ;;  %1232 = vst [vmem:[%s2284_s4] sm:$0xff] %v1231_v47  ;;  %v1237_v50 = vld [vmem:[%s2288_s21 + $0x30] sm:$0xff]  ;;  %p1260_p12 = scmp.ge.s32.totalorder %s1259_s24, %s3009_s23  ;;  %p1224_p6 = scmp.ge.s32.totalorder %s1225_s22, %s3009_s23 }
 0x1d4   : >> { %1234 = vst [vmem:[%s2284_s4 + $0x18] sm:$0xff] %v1233_v48  ;;  %v1239_v51 = vld [vmem:[%s2288_s21 + $0x40] sm:$0xff]  ;;  %v1241_v52 = vld [vmem:[%s2288_s21 + $0x50] sm:$0xff] }
 0x1d5   : >> { %1236 = vst [vmem:[%s2284_s4 + $0x30] sm:$0xff] %v1235_v49  ;;  %s3217_s24 = smov (%p1260_p12, %s1259_s24), 0  ;;  %v1243_v53 = vld [vmem:[%s2288_s21 + $0x60] sm:$0xff]  ;;  %v1245_v54 = vld [vmem:[%s2288_s21 + $0x70] sm:$0xff] }
 0x1d6   : >> { %1238 = vst [vmem:[%s2284_s4 + $0x48] sm:$0xff] %v1237_v50  ;;  %s1636_s29 = sshll.u32 %s3217_s24, 3  ;;  %v1247_v57 = vld [vmem:[%s2288_s21 + $0x80] sm:$0xff]  ;;  %v1249_v60 = vld [vmem:[%s2288_s21 + $0x90] sm:$0xff]  ;;  %s3189_s11 = smov %s3217_s24 }
 0x1d7   : >> { %1240 = vst [vmem:[%s2284_s4 + $0x60] sm:$0xff] %v1239_v51  ;;  %s1264_s6 = scalar_lea.vmem %s3013_s8, %s1636_s29 [#allocation3]   ;;  %s1265_s26 = scalar_lea.vmem %s3016_s9, %s1636_s29   ;;  %v1251_v62 = vld [vmem:[%s2288_s21 + $0xa0] sm:$0xff]  ;;  %v1253_v63 = vld [vmem:[%s2288_s21 + $0xb0] sm:$0xff] }
 0x1d8   : >> { %1242 = vst [vmem:[%s2284_s4 + $0x78] sm:$0xff] %v1241_v52  ;;  %v1255_v0 = vld [vmem:[%s2288_s21 + $0xc0] sm:$0xff]  ;;  %v1257_v56 = vld [vmem:[%s2288_s21 + $0xd0] sm:$0xff]  ;;  %s3188_s21 = smov %s1264_s6 }
 0x1d9   : >> { %1244 = vst [vmem:[%s2284_s4 + $0x90] sm:$0xff] %v1243_v53 }
 0x1da   : >> { %1246 = vst [vmem:[%s2284_s4 + $0xa8] sm:$0xff] %v1245_v54 }
 0x1db   : >> { %1248 = vst [vmem:[%s2284_s4 + $0xc0] sm:$0xff] %v1247_v57 }
 0x1dc   : >> { %1250 = vst [vmem:[%s2284_s4 + $0xd8] sm:$0xff] %v1249_v60  ;;  %1227 = sbr.rel (!%p1224_p6) target bundleno = 466 (0x1d2), region = 312 }
 0x1dd   : >> { %1252 = vst [vmem:[%s2284_s4 + $0xf0] sm:$0xff] %v1251_v62 }
 0x1de   : >> { %1254 = vst [vmem:[%s2284_s4 + $0x108] sm:$0xff] %v1253_v63 }
 0x1df   : >> { %1256 = vst [vmem:[%s2284_s4 + $0x120] sm:$0xff] %v1255_v0 }
 0x1e0   : >> { %1258 = vst [vmem:[%s2284_s4 + $0x138] sm:$0xff] %v1257_v56  ;;  %s3187_s4 = smov %s1265_s26 }
 0x1e1 PF: > { %s2301_s28 = smov 1  }
 0x1e2   : > { %s1266_s15 = sshll.u32 %s2301_s28, %s2676_s14 }
 0x1e3   : > { %s1638_s10 = sadd.s32 4294967295, %s1266_s15 }
 0x1e4   : > { %v1276_v2 = vld [vmem:[%s2881_s12] sm:%s1638_s10]  ;;  %v1278_v3 = vld [vmem:[%s2881_s12 + $0x10] sm:%s1638_s10] }
 0x1e5   : > { %1277 = vst [vmem:[%s2884_s7] sm:%s1638_s10] %v1276_v2  ;;  %v1280_v4 = vld [vmem:[%s2881_s12 + $0x20] sm:%s1638_s10] }
 0x1e6   : > { %1279 = vst [vmem:[%s2884_s7 + $0x18] sm:%s1638_s10] %v1278_v3  ;;  %v1282_v5 = vld [vmem:[%s2881_s12 + $0x30] sm:%s1638_s10] }
 0x1e7   : > { %1281 = vst [vmem:[%s2884_s7 + $0x30] sm:%s1638_s10] %v1280_v4  ;;  %v1284_v6 = vld [vmem:[%s2881_s12 + $0x40] sm:%s1638_s10] }
 0x1e8   : > { %1283 = vst [vmem:[%s2884_s7 + $0x48] sm:%s1638_s10] %v1282_v5  ;;  %v1286_v7 = vld [vmem:[%s2881_s12 + $0x50] sm:%s1638_s10] }
 0x1e9   : > { %1285 = vst [vmem:[%s2884_s7 + $0x60] sm:%s1638_s10] %v1284_v6  ;;  %v1288_v8 = vld [vmem:[%s2881_s12 + $0x60] sm:%s1638_s10] }
 0x1ea   : > { %1287 = vst [vmem:[%s2884_s7 + $0x78] sm:%s1638_s10] %v1286_v7  ;;  %v1290_v9 = vld [vmem:[%s2881_s12 + $0x70] sm:%s1638_s10] }
 0x1eb   : > { %1289 = vst [vmem:[%s2884_s7 + $0x90] sm:%s1638_s10] %v1288_v8  ;;  %v1292_v10 = vld [vmem:[%s2881_s12 + $0x80] sm:%s1638_s10] }
 0x1ec   : > { %1291 = vst [vmem:[%s2884_s7 + $0xa8] sm:%s1638_s10] %v1290_v9  ;;  %v1294_v11 = vld [vmem:[%s2881_s12 + $0x90] sm:%s1638_s10] }
 0x1ed   : > { %1293 = vst [vmem:[%s2884_s7 + $0xc0] sm:%s1638_s10] %v1292_v10  ;;  %v1296_v12 = vld [vmem:[%s2881_s12 + $0xa0] sm:%s1638_s10] }
 0x1ee   : > { %1295 = vst [vmem:[%s2884_s7 + $0xd8] sm:%s1638_s10] %v1294_v11  ;;  %v1298_v13 = vld [vmem:[%s2881_s12 + $0xb0] sm:%s1638_s10] }
 0x1ef   : > { %1297 = vst [vmem:[%s2884_s7 + $0xf0] sm:%s1638_s10] %v1296_v12  ;;  %v1300_v14 = vld [vmem:[%s2881_s12 + $0xc0] sm:%s1638_s10] }
 0x1f0   : > { %1299 = vst [vmem:[%s2884_s7 + $0x108] sm:%s1638_s10] %v1298_v13  ;;  %v1302_v16 = vld [vmem:[%s2881_s12 + $0xd0] sm:%s1638_s10] }
 0x1f1   : > { %1301 = vst [vmem:[%s2884_s7 + $0x120] sm:%s1638_s10] %v1300_v14 }
 0x1f2   : > { %1303 = vst [vmem:[%s2884_s7 + $0x138] sm:%s1638_s10] %v1302_v16 }
 0x1f3 PF: > { %p1639_p13 = scmp.ge.u32.totalorder %s2672_s25, 8 }
 0x1f4   : > { %s2302_s14 = smov (!%p1639_p13), 1  }
 0x1f5   : > { %852 = sbr.rel (%p1639_p13) target bundleno = 521 (0x209), region = 114  ;;  %s853_s12 = sshll.u32 (!%p1639_p13), %s2302_s14, %s2672_s25 }
 0x1f6   : > { %s1640_s7 = sadd.s32 (!%p1639_p13), 4294967295, %s853_s12 }
 0x1fa   : > { %v863_v17 = vld [vmem:[%s2617_s30] sm:%s1640_s7]  ;;  %v865_v55 = vld [vmem:[%s2617_s30 + $0x10] sm:%s1640_s7] }
 0x1fb   : > { %864 = vst [vmem:[%s2670_s5] sm:%s1640_s7] %v863_v17  ;;  %v867_v18 = vld [vmem:[%s2617_s30 + $0x20] sm:%s1640_s7] }
 0x1fc   : > { %866 = vst [vmem:[%s2670_s5 + $0x18] sm:%s1640_s7] %v865_v55  ;;  %v869_v19 = vld [vmem:[%s2617_s30 + $0x30] sm:%s1640_s7] }
 0x1fd   : > { %868 = vst [vmem:[%s2670_s5 + $0x30] sm:%s1640_s7] %v867_v18  ;;  %v871_v20 = vld [vmem:[%s2617_s30 + $0x40] sm:%s1640_s7] }
 0x1fe   : > { %870 = vst [vmem:[%s2670_s5 + $0x48] sm:%s1640_s7] %v869_v19  ;;  %v873_v21 = vld [vmem:[%s2617_s30 + $0x50] sm:%s1640_s7] }
 0x1ff   : > { %872 = vst [vmem:[%s2670_s5 + $0x60] sm:%s1640_s7] %v871_v20  ;;  %v875_v61 = vld [vmem:[%s2617_s30 + $0x60] sm:%s1640_s7] }
 0x200   : > { %874 = vst [vmem:[%s2670_s5 + $0x78] sm:%s1640_s7] %v873_v21  ;;  %v877_v22 = vld [vmem:[%s2617_s30 + $0x70] sm:%s1640_s7] }
 0x201   : > { %876 = vst [vmem:[%s2670_s5 + $0x90] sm:%s1640_s7] %v875_v61  ;;  %v879_v23 = vld [vmem:[%s2617_s30 + $0x80] sm:%s1640_s7] }
 0x202   : > { %878 = vst [vmem:[%s2670_s5 + $0xa8] sm:%s1640_s7] %v877_v22  ;;  %v881_v24 = vld [vmem:[%s2617_s30 + $0x90] sm:%s1640_s7] }
 0x203   : > { %880 = vst [vmem:[%s2670_s5 + $0xc0] sm:%s1640_s7] %v879_v23  ;;  %v883_v25 = vld [vmem:[%s2617_s30 + $0xa0] sm:%s1640_s7] }
 0x204   : > { %882 = vst [vmem:[%s2670_s5 + $0xd8] sm:%s1640_s7] %v881_v24  ;;  %v885_v26 = vld [vmem:[%s2617_s30 + $0xb0] sm:%s1640_s7] }
 0x205   : > { %884 = vst [vmem:[%s2670_s5 + $0xf0] sm:%s1640_s7] %v883_v25  ;;  %v887_v27 = vld [vmem:[%s2617_s30 + $0xc0] sm:%s1640_s7] }
 0x206   : > { %886 = vst [vmem:[%s2670_s5 + $0x108] sm:%s1640_s7] %v885_v26  ;;  %v889_v58 = vld [vmem:[%s2617_s30 + $0xd0] sm:%s1640_s7] }
 0x207   : > { %888 = vst [vmem:[%s2670_s5 + $0x120] sm:%s1640_s7] %v887_v27 }
 0x208   : > { %890 = vst [vmem:[%s2670_s5 + $0x138] sm:%s1640_s7] %v889_v58 }
 0x209 PF: > { %s13_s18 = sadd.s32 1, %s2200_s18   ;;  %s3190_s12 = smov %s2180_s13 }
 0x20a   : > { %p10_p0 = scmp.ge.s32.totalorder %s13_s18, 6   ;;  %s3191_s13 = smov %s2379_s27 }
 0x20b   : > { %s3192_s14 = smov %s2192_s16  ;;  %s3193_s15 = smov %s2196_s17 }
 0x20c   : > { %s3194_s16 = smov %s3197_s19  ;;  %s3195_s17 = smov %s3201_s20 }
 0x20d   :  { %12 = sbr.rel (!%p10_p0) target bundleno = 4 (0x4), region = 323 }

</bundles_post_ra>
